<compile_context>
chip_gen: v7x
topology: tpu7x:2x2x1
jax: 0.10.0
libtpu: 0.0.40
codegen_flags: <defaults>
</compile_context>

<pallas_src>
import functools

import jax
import jax.numpy as jnp
from jax.experimental import pallas as pl
from jax.experimental.pallas import tpu as pltpu


def _round_up_to(v, m):
    return ((v + m - 1) // m) * m


# ----------------------------- Pallas kernel ---------------------------------

def _treelstm_level_kernel(node_ids_ref, child_ids_ref,        # SMEM schedule
                           x_ref, wx_ref, bx_ref, wfh_ref,     # VMEM inputs
                           hc_ref,                              # VMEM output: fused (h|c) state
                           child_buf, stage,                    # VMEM scratch
                           *, n_levels, l_max, k_max, hidden_pad, batch):
    """Whole-tree TreeLSTM forward, one level per loop iteration.

    node_ids_ref : (n_levels*l_max,)        int32 writeback row per node slot (DUMP row for pads)
    child_ids_ref: (n_levels*k_max*l_max,)  int32 child state rows, [level][k][slot j] order,
                                            NULL row for padded child slots
    x_ref        : (n_levels, l_max*B, Hp)  level-ordered, zero-padded node inputs
    wx_ref       : (Hp, 4*Hp)               fused pre-transposed [W_i | W_o | W_u | W_fx]
    bx_ref       : (1, 4*Hp)                fused bias           [b_i | b_o | b_u | b_fx + b_fh]
    wfh_ref      : (Hp, Hp)                 pre-transposed W_fh
    hc_ref       : (S+2, B, 2*Hp)           fused hidden|cell state, VMEM-resident for whole tree;
                                            row S = always-zero null child row, row S+1 = dump row
    child_buf    : (k_max*l_max*B, 2*Hp)    gathered child states for one level
    stage        : (l_max*B, 2*Hp)          staged (h|c) writeback for one level
    """
    Hp = hidden_pad
    B = batch
    LB = l_max * B

    # Zero-init: unscheduled seq rows must output h == 0 (reference semantics) and
    # row S is the null-child row.  Invariant (enforced by _build_schedule): every
    # real child row is written at a strictly lower level before it is read here.
    hc_ref[...] = jnp.zeros_like(hc_ref)

    # Hoisted loop-invariant bias broadcast (JAX does not CSE broadcast_in_dim).
    bx_b = jnp.broadcast_to(bx_ref[...], (LB, 4 * Hp))

    @pl.loop(0, n_levels)
    def _(l):
        # ---- fused x-side gate projection for the whole level (one MXU pass) ----
        x_l = x_ref[l]                                              # (LB, Hp)
        gates = jnp.dot(x_l, wx_ref[...],
                        preferred_element_type=jnp.float32) + bx_b  # (LB, 4Hp)
        i_g = jax.nn.sigmoid(gates[:, 0:Hp])
        o_g = jax.nn.sigmoid(gates[:, Hp:2 * Hp])
        u_g = jnp.tanh(gates[:, 2 * Hp:3 * Hp])
        fx = gates[:, 3 * Hp:4 * Hp]                                # b_fx + b_fh already folded in

        # ---- gather all children's fused (h|c) rows into one contiguous slab ----
        cbase = l * (k_max * l_max)
        for s in range(k_max * l_max):                              # static unroll
            cid = child_ids_ref[cbase + s]                          # NULL row for padded slots
            child_buf[s * B:(s + 1) * B, :] = hc_ref[cid]

        cbuf = child_buf[...]                                       # (k_max*LB, 2Hp)
        ch_all = cbuf[:, 0:Hp]                                      # child h
        fh_all = jnp.dot(ch_all, wfh_ref[...],
                         preferred_element_type=jnp.float32)        # (k_max*LB, Hp), one MXU pass

        # Per-child-slot combine; padded slots read the null row (c == 0) so they
        # contribute exactly zero — no masks needed.
        f_sum = jnp.zeros((LB, Hp), jnp.float32)
        for k in range(k_max):                                      # static unroll (k_max small)
            f_k = jax.nn.sigmoid(fx + fh_all[k * LB:(k + 1) * LB, :])
            cc_k = cbuf[k * LB:(k + 1) * LB, Hp:2 * Hp]             # child c
            f_sum = f_sum + f_k * cc_k

        # ---- combine gates + single fused (h|c) writeback per node --------------
        c_new = i_g * u_g + f_sum
        h_new = o_g * jnp.tanh(c_new)
        stage[:, 0:Hp] = h_new                                      # lane-dense stores
        stage[:, Hp:2 * Hp] = c_new
        nbase = l * l_max
        for j in range(l_max):                                      # static unroll
            nid = node_ids_ref[nbase + j]                           # DUMP row for padded slots
            hc_ref[nid] = stage[j * B:(j + 1) * B, :]


# ----------------------------- host-side schedule -----------------------------

def _build_schedule(tree_structure, seq_len):
    """Group tree nodes by depth level (children strictly below their parent).

    Returns None if there are no dict nodes.  Otherwise:
      node_ids  : (n_levels*l_max,)         int32, DUMP for padded node slots
      child_ids : (n_levels*k_max*l_max,)   int32, [level][child k][slot j], NULL for pads
      gather_idx: (n_levels*l_max,)         int32 seq positions for pre-gathering x
      n_levels, l_max, k_max : python ints
    NULL = seq_len (always-zero state row), DUMP = seq_len + 1 (write-only scratch row).
    """
    levels = []

    def walk(node):
        if isinstance(node, str):
            # String leaves never update h/c in the reference -> contribute zeros.
            return None
        kids = [walk(ch) for ch in node.get('children', [])]
        kids = [k for k in kids if k is not None]
        lvl = 0 if not kids else max(k[1] for k in kids) + 1
        while len(levels) <= lvl:
            levels.append([])
        nid = int(node['id'])
        assert 0 <= nid < seq_len, f"tree node id {nid} out of range [0, {seq_len})"
        levels[lvl].append((nid, [k[0] for k in kids]))
        return (nid, lvl)

    for root in tree_structure['roots']:
        walk(root)

    n_nodes = sum(len(lv) for lv in levels)
    if n_nodes == 0:
        return None

    n_levels = len(levels)
    l_max = max(len(lv) for lv in levels)
    k_max = max([len(kids) for lv in levels for _, kids in lv] + [1])
    NULL, DUMP = seq_len, seq_len + 1

    node_ids, gather_idx, child_ids = [], [], []
    for lv in levels:
        for j in range(l_max):                          # node slots
            if j < len(lv):
                node_ids.append(lv[j][0])
                gather_idx.append(lv[j][0])
            else:
                node_ids.append(DUMP)
                gather_idx.append(0)
        for k in range(k_max):                          # child slots, child-major
            for j in range(l_max):
                kids = lv[j][1] if j < len(lv) else []
                child_ids.append(kids[k] if k < len(kids) else NULL)

    return (jnp.asarray(node_ids, jnp.int32),
            jnp.asarray(child_ids, jnp.int32),
            jnp.asarray(gather_idx, jnp.int32),
            n_levels, l_max, k_max)


def _fuse_params(params, hidden, hidden_pad):
    """Pre-transpose, zero-pad to 128 lanes, and fuse weights host-side (once)."""
    H, Hp = hidden, hidden_pad

    def pad_w(w):                                   # (out,in) -> transposed (in,out), padded
        return jnp.pad(w.T, ((0, Hp - H), (0, Hp - H)))

    def pad_b(b):                                   # (1,H) -> (1,Hp)
        return jnp.pad(b, ((0, 0), (0, Hp - H)))

    wx = jnp.concatenate([pad_w(params['w_i']), pad_w(params['w_o']),
                          pad_w(params['w_u']), pad_w(params['w_fx'])], axis=1)   # (Hp, 4Hp)
    bx = jnp.concatenate([pad_b(params['b_i']), pad_b(params['b_o']),
                          pad_b(params['b_u']),
                          pad_b(params['b_fx'] + params['b_fh'])], axis=1)        # (1, 4Hp)
    wfh = pad_w(params['w_fh'])                                                   # (Hp, Hp)
    return wx, bx, wfh


def tree_lstm_forward(x, tree_structure, params):
    """Mirrors TreeLSTM.forward.  Tree flattening / level batching is host-side
    (trace-time static); all per-node math runs inside a single Pallas kernel."""
    if tree_structure is None:
        return x

    B, S, H = x.shape
    sched = _build_schedule(tree_structure, S)
    if sched is None:
        return jnp.zeros_like(x)
    node_ids, child_ids, gather_idx, n_levels, l_max, k_max = sched

    H_pad = _round_up_to(H, 128)
    wx, bx, wfh = _fuse_params(params, H, H_pad)

    # Pre-gather x into level-slot order (one XLA gather, outside the kernel);
    # row order inside a level is (node slot j, batch b) == kernel matmul row order.
    xf = x.astype(jnp.float32)
    x_lvl = jnp.transpose(jnp.take(xf, gather_idx, axis=1), (1, 0, 2))   # (n_levels*l_max, B, H)
    x_lvl = jnp.pad(x_lvl, ((0, 0), (0, 0), (0, H_pad - H)))
    x_lvl = x_lvl.reshape(n_levels, l_max * B, H_pad)

    # Explicit scoped-VMEM budget: resident x / state / weights / scratch + headroom.
    state_elems = (S + 2) * B * 2 * H_pad
    scratch_elems = (k_max + 1) * l_max * B * 2 * H_pad
    total_bytes = 4 * (x_lvl.size + wx.size + bx.size + wfh.size
                       + state_elems + scratch_elems)
    vmem_limit = int(min(max(2 * total_bytes + (4 << 20), 32 << 20), 64 << 20))

    kernel = functools.partial(
        _treelstm_level_kernel,
        n_levels=n_levels, l_max=l_max, k_max=k_max, hidden_pad=H_pad, batch=B)

    smem = pl.BlockSpec(memory_space=pltpu.MemorySpace.SMEM)
    vmem = pl.BlockSpec(memory_space=pltpu.MemorySpace.VMEM)

    hc = pl.pallas_call(
        kernel,
        out_shape=jax.ShapeDtypeStruct((S + 2, B, 2 * H_pad), jnp.float32),
        in_specs=[smem, smem, vmem, vmem, vmem, vmem],
        out_specs=vmem,
        scratch_shapes=[
            pltpu.VMEM((k_max * l_max * B, 2 * H_pad), jnp.float32),   # gathered children
            pltpu.VMEM((l_max * B, 2 * H_pad), jnp.float32),           # writeback stage
        ],
        compiler_params=pltpu.CompilerParams(vmem_limit_bytes=vmem_limit),
    )(node_ids, child_ids, x_lvl, wx, bx, wfh)

    # Strip padding rows/lanes, keep the h half, back to (B, S, H).
    return jnp.transpose(hc[:S, :, :H], (1, 0, 2)).astype(x.dtype)


# --------------------------- pure-JAX reference -------------------------------

def tree_lstm_reference(x, tree_structure, params):
    if tree_structure is None:
        return x
    h = jnp.zeros_like(x)
    c = jnp.zeros_like(x)

    def lin(v, w, b):
        return v @ w.T + b[0]

    def process_node(node_id, node):
        nonlocal h, c
        if isinstance(node, str):
            return h[:, node_id], c[:, node_id]
        kids = [process_node(ch['id'], ch) for ch in node['children']]
        xn = x[:, node_id]
        i = jax.nn.sigmoid(lin(xn, params['w_i'], params['b_i']))
        o = jax.nn.sigmoid(lin(xn, params['w_o'], params['b_o']))
        u = jnp.tanh(lin(xn, params['w_u'], params['b_u']))
        fx = lin(xn, params['w_fx'], params['b_fx'])
        f_sum = jnp.zeros_like(xn)
        for chh, chc in kids:
            f = jax.nn.sigmoid(fx + lin(chh, params['w_fh'], params['b_fh']))
            f_sum = f_sum + f * chc
        c_new = i * u + f_sum
        h_new = o * jnp.tanh(c_new)
        h = h.at[:, node_id].set(h_new)
        c = c.at[:, node_id].set(c_new)
        return h_new, c_new

    for root in tree_structure['roots']:
        process_node(root['id'], root)
    return h


# ----------------------------------- main -------------------------------------

def _init_params(key, hidden):
    # Deterministic synthetic init (PyTorch-Linear-like uniform bounds).
    bound = 1.0 / (hidden ** 0.5)
    keys = jax.random.split(key, 10)

    def unif(k, shape):
        return jax.random.uniform(k, shape, jnp.float32, -bound, bound)

    w_ioux = unif(keys[0], (3 * hidden, hidden))
    b_ioux = unif(keys[1], (3 * hidden,))
    return {
        'w_i': w_ioux[:hidden],
        'w_o': w_ioux[hidden:2 * hidden],
        'w_u': w_ioux[2 * hidden:],
        'b_i': b_ioux[:hidden].reshape(1, hidden),
        'b_o': b_ioux[hidden:2 * hidden].reshape(1, hidden),
        'b_u': b_ioux[2 * hidden:].reshape(1, hidden),
        'w_fx': unif(keys[2], (hidden, hidden)),
        'b_fx': unif(keys[3], (1, hidden)),
        'w_fh': unif(keys[4], (hidden, hidden)),
        'b_fh': unif(keys[5], (1, hidden)),
        # NOTE: self.iouh exists in __init__ but is unused in forward().
    }


if __name__ == "__main__":
    B, S, H = 2, 8, 32
    key = jax.random.PRNGKey(0)
    k_x, k_p = jax.random.split(key)

    x = jax.random.normal(k_x, (B, S, H), dtype=jnp.float32)
    params = _init_params(k_p, H)

    leaf = lambda i: {'id': i, 'children': []}
    tree = {
        'roots': [
            {'id': 7, 'children': [
                {'id': 3, 'children': [leaf(0), leaf(1), leaf(2)]},
                {'id': 6, 'children': [leaf(4), leaf(5)]},
            ]},
        ]
    }

    out = jax.block_until_ready(tree_lstm_forward(x, tree, params))

    # tree_structure=None path: identity.
    out_none = jax.block_until_ready(tree_lstm_forward(x, None, params))
    assert jnp.array_equal(out_none, x)

    ref = jax.block_until_ready(tree_lstm_reference(x, tree, params))
    assert out.shape == (B, S, H)
    assert jnp.allclose(out, ref, atol=1e-4, rtol=1e-4), "mismatch vs reference"

    print("KERNEL_OK")
</pallas_src>

<mosaic_0001>
module attributes {stable_mosaic.version = 11 : i64} {
  func.func @_treelstm_level_kernel(%arg0: memref<15xi32, #tpu.memory_space<smem>>, %arg1: memref<45xi32, #tpu.memory_space<smem>>, %arg2: memref<3x10x128xf32, #tpu.memory_space<vmem>>, %arg3: memref<128x512xf32, #tpu.memory_space<vmem>>, %arg4: memref<1x512xf32, #tpu.memory_space<vmem>>, %arg5: memref<128x128xf32, #tpu.memory_space<vmem>>, %arg6: memref<10x2x256xf32, #tpu.memory_space<vmem>>, %arg7: memref<30x256xf32, #tpu.memory_space<vmem>>, %arg8: memref<10x256xf32, #tpu.memory_space<vmem>>) attributes {dimension_semantics = [], scalar_prefetch = 0 : i64, scratch_operands = 2 : i64, tpu.core_type = #tpu.core_type<tc>} {
    %cst = arith.constant 0.000000e+00 : f32
    %0 = vector.broadcast %cst : f32 to vector<10x2x256xf32>
    %c0 = arith.constant 0 : index
    %c0_0 = arith.constant 0 : index
    %c0_1 = arith.constant 0 : index
    %1 = vector.load %arg6[%c0, %c0_0, %c0_1] : memref<10x2x256xf32, #tpu.memory_space<vmem>>, vector<10x2x256xf32>
    tpu.vector_store %arg6[%c0, %c0_0, %c0_1], %0 {strides = array<i32>} : memref<10x2x256xf32, #tpu.memory_space<vmem>>, vector<10x2x256xf32>,
    %c0_2 = arith.constant 0 : index
    %c0_3 = arith.constant 0 : index
    %2 = vector.load %arg4[%c0_2, %c0_3] : memref<1x512xf32, #tpu.memory_space<vmem>>, vector<1x512xf32>
    %3 = vector.shape_cast %2 : vector<1x512xf32> to vector<1x512xf32>
    %4 = vector.broadcast %3 : vector<1x512xf32> to vector<10x512xf32>
    %c0_i32 = arith.constant 0 : i32
    %c3_i32 = arith.constant 3 : i32
    %5 = arith.addi %c0_i32, %c3_i32 : i32
    %c1_i32 = arith.constant 1 : i32
    scf.for %arg9 = %c0_i32 to %5 step %c1_i32  : i32 {
      %c1_i32_5 = arith.constant 1 : i32
      %6 = arith.muli %arg9, %c1_i32_5 : i32
      %c0_i32_6 = arith.constant 0 : i32
      %7 = arith.addi %c0_i32_6, %6 : i32
      %8 = arith.index_cast %7 : i32 to index
      %c0_7 = arith.constant 0 : index
      %c0_8 = arith.constant 0 : index
      %9 = vector.load %arg2[%8, %c0_7, %c0_8] : memref<3x10x128xf32, #tpu.memory_space<vmem>>, vector<1x10x128xf32>
      %10 = vector.shape_cast %9 : vector<1x10x128xf32> to vector<10x128xf32>
      %c0_9 = arith.constant 0 : index
      %c0_10 = arith.constant 0 : index
      %11 = vector.load %arg3[%c0_9, %c0_10] : memref<128x512xf32, #tpu.memory_space<vmem>>, vector<128x512xf32>
      %cst_11 = arith.constant dense<0.000000e+00> : vector<10x512xf32>
      %12 = tpu.matmul %10, %11, %cst_11 {dimension_numbers = #tpu.dot_dimension_numbers<[1], [0], [0], [1], [0, 0, 1, 1], [], []>} : vector<10x128xf32>, vector<128x512xf32>, vector<10x512xf32> -> vector<10x512xf32>
      %13 = arith.addf %12, %4 : vector<10x512xf32>
      %14 = vector.extract_strided_slice %13 {offsets = [0, 0], sizes = [10, 128], strides = [1, 1]} : vector<10x512xf32> to vector<10x128xf32>
      %15 = arith.negf %14 : vector<10x128xf32>
      %16 = math.exp %15 : vector<10x128xf32>
      %cst_12 = arith.constant 1.000000e+00 : f32
      %17 = vector.broadcast %cst_12 : f32 to vector<10x128xf32>
      %18 = arith.addf %17, %16 : vector<10x128xf32>
      %19 = arith.divf %17, %18 : vector<10x128xf32>
      %20 = vector.extract_strided_slice %13 {offsets = [0, 128], sizes = [10, 128], strides = [1, 1]} : vector<10x512xf32> to vector<10x128xf32>
      %21 = arith.negf %20 : vector<10x128xf32>
      %22 = math.exp %21 : vector<10x128xf32>
      %cst_13 = arith.constant 1.000000e+00 : f32
      %23 = vector.broadcast %cst_13 : f32 to vector<10x128xf32>
      %24 = arith.addf %23, %22 : vector<10x128xf32>
      %25 = arith.divf %23, %24 : vector<10x128xf32>
      %26 = vector.extract_strided_slice %13 {offsets = [0, 256], sizes = [10, 128], strides = [1, 1]} : vector<10x512xf32> to vector<10x128xf32>
      %27 = math.tanh %26 : vector<10x128xf32>
      %28 = vector.extract_strided_slice %13 {offsets = [0, 384], sizes = [10, 128], strides = [1, 1]} : vector<10x512xf32> to vector<10x128xf32>
      %c15_i32 = arith.constant 15 : i32
      %29 = arith.muli %7, %c15_i32 : i32
      %c0_i32_14 = arith.constant 0 : i32
      %30 = arith.addi %29, %c0_i32_14 : i32
      %31 = arith.index_cast %30 : i32 to index
      %32 = memref.load %arg1[%31] : memref<45xi32, #tpu.memory_space<smem>>
      %33 = arith.index_cast %32 : i32 to index
      %c0_15 = arith.constant 0 : index
      %c0_16 = arith.constant 0 : index
      %34 = vector.load %arg6[%33, %c0_15, %c0_16] : memref<10x2x256xf32, #tpu.memory_space<vmem>>, vector<1x2x256xf32>
      %35 = vector.shape_cast %34 : vector<1x2x256xf32> to vector<2x256xf32>
      %c0_17 = arith.constant 0 : index
      %c0_18 = arith.constant 0 : index
      %36 = vector.load %arg7[%c0_17, %c0_18] : memref<30x256xf32, #tpu.memory_space<vmem>>, vector<2x256xf32>
      tpu.vector_store %arg7[%c0_17, %c0_18], %35 {strides = array<i32>} : memref<30x256xf32, #tpu.memory_space<vmem>>, vector<2x256xf32>,
      %c1_i32_19 = arith.constant 1 : i32
      %37 = arith.addi %29, %c1_i32_19 : i32
      %38 = arith.index_cast %37 : i32 to index
      %39 = memref.load %arg1[%38] : memref<45xi32, #tpu.memory_space<smem>>
      %40 = arith.index_cast %39 : i32 to index
      %c0_20 = arith.constant 0 : index
      %c0_21 = arith.constant 0 : index
      %41 = vector.load %arg6[%40, %c0_20, %c0_21] : memref<10x2x256xf32, #tpu.memory_space<vmem>>, vector<1x2x256xf32>
      %42 = vector.shape_cast %41 : vector<1x2x256xf32> to vector<2x256xf32>
      %c2 = arith.constant 2 : index
      %c0_22 = arith.constant 0 : index
      %43 = vector.load %arg7[%c2, %c0_22] : memref<30x256xf32, #tpu.memory_space<vmem>>, vector<2x256xf32>
      tpu.vector_store %arg7[%c2, %c0_22], %42 {strides = array<i32>} : memref<30x256xf32, #tpu.memory_space<vmem>>, vector<2x256xf32>,
      %c2_i32 = arith.constant 2 : i32
      %44 = arith.addi %29, %c2_i32 : i32
      %45 = arith.index_cast %44 : i32 to index
      %46 = memref.load %arg1[%45] : memref<45xi32, #tpu.memory_space<smem>>
      %47 = arith.index_cast %46 : i32 to index
      %c0_23 = arith.constant 0 : index
      %c0_24 = arith.constant 0 : index
      %48 = vector.load %arg6[%47, %c0_23, %c0_24] : memref<10x2x256xf32, #tpu.memory_space<vmem>>, vector<1x2x256xf32>
      %49 = vector.shape_cast %48 : vector<1x2x256xf32> to vector<2x256xf32>
      %c4 = arith.constant 4 : index
      %c0_25 = arith.constant 0 : index
      %50 = vector.load %arg7[%c4, %c0_25] : memref<30x256xf32, #tpu.memory_space<vmem>>, vector<2x256xf32>
      tpu.vector_store %arg7[%c4, %c0_25], %49 {strides = array<i32>} : memref<30x256xf32, #tpu.memory_space<vmem>>, vector<2x256xf32>,
      %c3_i32_26 = arith.constant 3 : i32
      %51 = arith.addi %29, %c3_i32_26 : i32
      %52 = arith.index_cast %51 : i32 to index
      %53 = memref.load %arg1[%52] : memref<45xi32, #tpu.memory_space<smem>>
      %54 = arith.index_cast %53 : i32 to index
      %c0_27 = arith.constant 0 : index
      %c0_28 = arith.constant 0 : index
      %55 = vector.load %arg6[%54, %c0_27, %c0_28] : memref<10x2x256xf32, #tpu.memory_space<vmem>>, vector<1x2x256xf32>
      %56 = vector.shape_cast %55 : vector<1x2x256xf32> to vector<2x256xf32>
      %c6 = arith.constant 6 : index
      %c0_29 = arith.constant 0 : index
      %57 = vector.load %arg7[%c6, %c0_29] : memref<30x256xf32, #tpu.memory_space<vmem>>, vector<2x256xf32>
      tpu.vector_store %arg7[%c6, %c0_29], %56 {strides = array<i32>} : memref<30x256xf32, #tpu.memory_space<vmem>>, vector<2x256xf32>,
      %c4_i32 = arith.constant 4 : i32
      %58 = arith.addi %29, %c4_i32 : i32
      %59 = arith.index_cast %58 : i32 to index
      %60 = memref.load %arg1[%59] : memref<45xi32, #tpu.memory_space<smem>>
      %61 = arith.index_cast %60 : i32 to index
      %c0_30 = arith.constant 0 : index
      %c0_31 = arith.constant 0 : index
      %62 = vector.load %arg6[%61, %c0_30, %c0_31] : memref<10x2x256xf32, #tpu.memory_space<vmem>>, vector<1x2x256xf32>
      %63 = vector.shape_cast %62 : vector<1x2x256xf32> to vector<2x256xf32>
      %c8 = arith.constant 8 : index
      %c0_32 = arith.constant 0 : index
      %64 = vector.load %arg7[%c8, %c0_32] : memref<30x256xf32, #tpu.memory_space<vmem>>, vector<2x256xf32>
      tpu.vector_store %arg7[%c8, %c0_32], %63 {strides = array<i32>} : memref<30x256xf32, #tpu.memory_space<vmem>>, vector<2x256xf32>,
      %c5_i32 = arith.constant 5 : i32
      %65 = arith.addi %29, %c5_i32 : i32
      %66 = arith.index_cast %65 : i32 to index
      %67 = memref.load %arg1[%66] : memref<45xi32, #tpu.memory_space<smem>>
      %68 = arith.index_cast %67 : i32 to index
      %c0_33 = arith.constant 0 : index
      %c0_34 = arith.constant 0 : index
      %69 = vector.load %arg6[%68, %c0_33, %c0_34] : memref<10x2x256xf32, #tpu.memory_space<vmem>>, vector<1x2x256xf32>
      %70 = vector.shape_cast %69 : vector<1x2x256xf32> to vector<2x256xf32>
      %c10 = arith.constant 10 : index
      %c0_35 = arith.constant 0 : index
      %71 = vector.load %arg7[%c10, %c0_35] : memref<30x256xf32, #tpu.memory_space<vmem>>, vector<2x256xf32>
      tpu.vector_store %arg7[%c10, %c0_35], %70 {strides = array<i32>} : memref<30x256xf32, #tpu.memory_space<vmem>>, vector<2x256xf32>,
      %c6_i32 = arith.constant 6 : i32
      %72 = arith.addi %29, %c6_i32 : i32
      %73 = arith.index_cast %72 : i32 to index
      %74 = memref.load %arg1[%73] : memref<45xi32, #tpu.memory_space<smem>>
      %75 = arith.index_cast %74 : i32 to index
      %c0_36 = arith.constant 0 : index
      %c0_37 = arith.constant 0 : index
      %76 = vector.load %arg6[%75, %c0_36, %c0_37] : memref<10x2x256xf32, #tpu.memory_space<vmem>>, vector<1x2x256xf32>
      %77 = vector.shape_cast %76 : vector<1x2x256xf32> to vector<2x256xf32>
      %c12 = arith.constant 12 : index
      %c0_38 = arith.constant 0 : index
      %78 = vector.load %arg7[%c12, %c0_38] : memref<30x256xf32, #tpu.memory_space<vmem>>, vector<2x256xf32>
      tpu.vector_store %arg7[%c12, %c0_38], %77 {strides = array<i32>} : memref<30x256xf32, #tpu.memory_space<vmem>>, vector<2x256xf32>,
      %c7_i32 = arith.constant 7 : i32
      %79 = arith.addi %29, %c7_i32 : i32
      %80 = arith.index_cast %79 : i32 to index
      %81 = memref.load %arg1[%80] : memref<45xi32, #tpu.memory_space<smem>>
      %82 = arith.index_cast %81 : i32 to index
      %c0_39 = arith.constant 0 : index
      %c0_40 = arith.constant 0 : index
      %83 = vector.load %arg6[%82, %c0_39, %c0_40] : memref<10x2x256xf32, #tpu.memory_space<vmem>>, vector<1x2x256xf32>
      %84 = vector.shape_cast %83 : vector<1x2x256xf32> to vector<2x256xf32>
      %c14 = arith.constant 14 : index
      %c0_41 = arith.constant 0 : index
      %85 = vector.load %arg7[%c14, %c0_41] : memref<30x256xf32, #tpu.memory_space<vmem>>, vector<2x256xf32>
      tpu.vector_store %arg7[%c14, %c0_41], %84 {strides = array<i32>} : memref<30x256xf32, #tpu.memory_space<vmem>>, vector<2x256xf32>,
      %c8_i32 = arith.constant 8 : i32
      %86 = arith.addi %29, %c8_i32 : i32
      %87 = arith.index_cast %86 : i32 to index
      %88 = memref.load %arg1[%87] : memref<45xi32, #tpu.memory_space<smem>>
      %89 = arith.index_cast %88 : i32 to index
      %c0_42 = arith.constant 0 : index
      %c0_43 = arith.constant 0 : index
      %90 = vector.load %arg6[%89, %c0_42, %c0_43] : memref<10x2x256xf32, #tpu.memory_space<vmem>>, vector<1x2x256xf32>
      %91 = vector.shape_cast %90 : vector<1x2x256xf32> to vector<2x256xf32>
      %c16 = arith.constant 16 : index
      %c0_44 = arith.constant 0 : index
      %92 = vector.load %arg7[%c16, %c0_44] : memref<30x256xf32, #tpu.memory_space<vmem>>, vector<2x256xf32>
      tpu.vector_store %arg7[%c16, %c0_44], %91 {strides = array<i32>} : memref<30x256xf32, #tpu.memory_space<vmem>>, vector<2x256xf32>,
      %c9_i32 = arith.constant 9 : i32
      %93 = arith.addi %29, %c9_i32 : i32
      %94 = arith.index_cast %93 : i32 to index
      %95 = memref.load %arg1[%94] : memref<45xi32, #tpu.memory_space<smem>>
      %96 = arith.index_cast %95 : i32 to index
      %c0_45 = arith.constant 0 : index
      %c0_46 = arith.constant 0 : index
      %97 = vector.load %arg6[%96, %c0_45, %c0_46] : memref<10x2x256xf32, #tpu.memory_space<vmem>>, vector<1x2x256xf32>
      %98 = vector.shape_cast %97 : vector<1x2x256xf32> to vector<2x256xf32>
      %c18 = arith.constant 18 : index
      %c0_47 = arith.constant 0 : index
      %99 = vector.load %arg7[%c18, %c0_47] : memref<30x256xf32, #tpu.memory_space<vmem>>, vector<2x256xf32>
      tpu.vector_store %arg7[%c18, %c0_47], %98 {strides = array<i32>} : memref<30x256xf32, #tpu.memory_space<vmem>>, vector<2x256xf32>,
      %c10_i32 = arith.constant 10 : i32
      %100 = arith.addi %29, %c10_i32 : i32
      %101 = arith.index_cast %100 : i32 to index
      %102 = memref.load %arg1[%101] : memref<45xi32, #tpu.memory_space<smem>>
      %103 = arith.index_cast %102 : i32 to index
      %c0_48 = arith.constant 0 : index
      %c0_49 = arith.constant 0 : index
      %104 = vector.load %arg6[%103, %c0_48, %c0_49] : memref<10x2x256xf32, #tpu.memory_space<vmem>>, vector<1x2x256xf32>
      %105 = vector.shape_cast %104 : vector<1x2x256xf32> to vector<2x256xf32>
      %c20 = arith.constant 20 : index
      %c0_50 = arith.constant 0 : index
      %106 = vector.load %arg7[%c20, %c0_50] : memref<30x256xf32, #tpu.memory_space<vmem>>, vector<2x256xf32>
      tpu.vector_store %arg7[%c20, %c0_50], %105 {strides = array<i32>} : memref<30x256xf32, #tpu.memory_space<vmem>>, vector<2x256xf32>,
      %c11_i32 = arith.constant 11 : i32
      %107 = arith.addi %29, %c11_i32 : i32
      %108 = arith.index_cast %107 : i32 to index
      %109 = memref.load %arg1[%108] : memref<45xi32, #tpu.memory_space<smem>>
      %110 = arith.index_cast %109 : i32 to index
      %c0_51 = arith.constant 0 : index
      %c0_52 = arith.constant 0 : index
      %111 = vector.load %arg6[%110, %c0_51, %c0_52] : memref<10x2x256xf32, #tpu.memory_space<vmem>>, vector<1x2x256xf32>
      %112 = vector.shape_cast %111 : vector<1x2x256xf32> to vector<2x256xf32>
      %c22 = arith.constant 22 : index
      %c0_53 = arith.constant 0 : index
      %113 = vector.load %arg7[%c22, %c0_53] : memref<30x256xf32, #tpu.memory_space<vmem>>, vector<2x256xf32>
      tpu.vector_store %arg7[%c22, %c0_53], %112 {strides = array<i32>} : memref<30x256xf32, #tpu.memory_space<vmem>>, vector<2x256xf32>,
      %c12_i32 = arith.constant 12 : i32
      %114 = arith.addi %29, %c12_i32 : i32
      %115 = arith.index_cast %114 : i32 to index
      %116 = memref.load %arg1[%115] : memref<45xi32, #tpu.memory_space<smem>>
      %117 = arith.index_cast %116 : i32 to index
      %c0_54 = arith.constant 0 : index
      %c0_55 = arith.constant 0 : index
      %118 = vector.load %arg6[%117, %c0_54, %c0_55] : memref<10x2x256xf32, #tpu.memory_space<vmem>>, vector<1x2x256xf32>
      %119 = vector.shape_cast %118 : vector<1x2x256xf32> to vector<2x256xf32>
      %c24 = arith.constant 24 : index
      %c0_56 = arith.constant 0 : index
      %120 = vector.load %arg7[%c24, %c0_56] : memref<30x256xf32, #tpu.memory_space<vmem>>, vector<2x256xf32>
      tpu.vector_store %arg7[%c24, %c0_56], %119 {strides = array<i32>} : memref<30x256xf32, #tpu.memory_space<vmem>>, vector<2x256xf32>,
      %c13_i32 = arith.constant 13 : i32
      %121 = arith.addi %29, %c13_i32 : i32
      %122 = arith.index_cast %121 : i32 to index
      %123 = memref.load %arg1[%122] : memref<45xi32, #tpu.memory_space<smem>>
      %124 = arith.index_cast %123 : i32 to index
      %c0_57 = arith.constant 0 : index
      %c0_58 = arith.constant 0 : index
      %125 = vector.load %arg6[%124, %c0_57, %c0_58] : memref<10x2x256xf32, #tpu.memory_space<vmem>>, vector<1x2x256xf32>
      %126 = vector.shape_cast %125 : vector<1x2x256xf32> to vector<2x256xf32>
      %c26 = arith.constant 26 : index
      %c0_59 = arith.constant 0 : index
      %127 = vector.load %arg7[%c26, %c0_59] : memref<30x256xf32, #tpu.memory_space<vmem>>, vector<2x256xf32>
      tpu.vector_store %arg7[%c26, %c0_59], %126 {strides = array<i32>} : memref<30x256xf32, #tpu.memory_space<vmem>>, vector<2x256xf32>,
      %c14_i32 = arith.constant 14 : i32
      %128 = arith.addi %29, %c14_i32 : i32
      %129 = arith.index_cast %128 : i32 to index
      %130 = memref.load %arg1[%129] : memref<45xi32, #tpu.memory_space<smem>>
      %131 = arith.index_cast %130 : i32 to index
      %c0_60 = arith.constant 0 : index
      %c0_61 = arith.constant 0 : index
      %132 = vector.load %arg6[%131, %c0_60, %c0_61] : memref<10x2x256xf32, #tpu.memory_space<vmem>>, vector<1x2x256xf32>
      %133 = vector.shape_cast %132 : vector<1x2x256xf32> to vector<2x256xf32>
      %c28 = arith.constant 28 : index
      %c0_62 = arith.constant 0 : index
      %134 = vector.load %arg7[%c28, %c0_62] : memref<30x256xf32, #tpu.memory_space<vmem>>, vector<2x256xf32>
      tpu.vector_store %arg7[%c28, %c0_62], %133 {strides = array<i32>} : memref<30x256xf32, #tpu.memory_space<vmem>>, vector<2x256xf32>,
      %c0_63 = arith.constant 0 : index
      %c0_64 = arith.constant 0 : index
      %135 = vector.load %arg7[%c0_63, %c0_64] : memref<30x256xf32, #tpu.memory_space<vmem>>, vector<30x256xf32>
      %136 = vector.extract_strided_slice %135 {offsets = [0, 0], sizes = [30, 128], strides = [1, 1]} : vector<30x256xf32> to vector<30x128xf32>
      %c0_65 = arith.constant 0 : index
      %c0_66 = arith.constant 0 : index
      %137 = vector.load %arg5[%c0_65, %c0_66] : memref<128x128xf32, #tpu.memory_space<vmem>>, vector<128x128xf32>
      %cst_67 = arith.constant dense<0.000000e+00> : vector<30x128xf32>
      %138 = tpu.matmul %136, %137, %cst_67 {dimension_numbers = #tpu.dot_dimension_numbers<[1], [0], [0], [1], [0, 0, 1, 1], [], []>} : vector<30x128xf32>, vector<128x128xf32>, vector<30x128xf32> -> vector<30x128xf32>
      %cst_68 = arith.constant 0.000000e+00 : f32
      %139 = vector.broadcast %cst_68 : f32 to vector<10x128xf32>
      %140 = vector.extract_strided_slice %138 {offsets = [0, 0], sizes = [10, 128], strides = [1, 1]} : vector<30x128xf32> to vector<10x128xf32>
      %141 = arith.addf %28, %140 : vector<10x128xf32>
      %142 = arith.negf %141 : vector<10x128xf32>
      %143 = math.exp %142 : vector<10x128xf32>
      %cst_69 = arith.constant 1.000000e+00 : f32
      %144 = vector.broadcast %cst_69 : f32 to vector<10x128xf32>
      %145 = arith.addf %144, %143 : vector<10x128xf32>
      %146 = arith.divf %144, %145 : vector<10x128xf32>
      %147 = vector.extract_strided_slice %135 {offsets = [0, 128], sizes = [10, 128], strides = [1, 1]} : vector<30x256xf32> to vector<10x128xf32>
      %148 = arith.mulf %146, %147 : vector<10x128xf32>
      %149 = arith.addf %139, %148 : vector<10x128xf32>
      %150 = vector.extract_strided_slice %138 {offsets = [10, 0], sizes = [10, 128], strides = [1, 1]} : vector<30x128xf32> to vector<10x128xf32>
      %151 = arith.addf %28, %150 : vector<10x128xf32>
      %152 = arith.negf %151 : vector<10x128xf32>
      %153 = math.exp %152 : vector<10x128xf32>
      %cst_70 = arith.constant 1.000000e+00 : f32
      %154 = vector.broadcast %cst_70 : f32 to vector<10x128xf32>
      %155 = arith.addf %154, %153 : vector<10x128xf32>
      %156 = arith.divf %154, %155 : vector<10x128xf32>
      %157 = vector.extract_strided_slice %135 {offsets = [10, 128], sizes = [10, 128], strides = [1, 1]} : vector<30x256xf32> to vector<10x128xf32>
      %158 = arith.mulf %156, %157 : vector<10x128xf32>
      %159 = arith.addf %149, %158 : vector<10x128xf32>
      %160 = vector.extract_strided_slice %138 {offsets = [20, 0], sizes = [10, 128], strides = [1, 1]} : vector<30x128xf32> to vector<10x128xf32>
      %161 = arith.addf %28, %160 : vector<10x128xf32>
      %162 = arith.negf %161 : vector<10x128xf32>
      %163 = math.exp %162 : vector<10x128xf32>
      %cst_71 = arith.constant 1.000000e+00 : f32
      %164 = vector.broadcast %cst_71 : f32 to vector<10x128xf32>
      %165 = arith.addf %164, %163 : vector<10x128xf32>
      %166 = arith.divf %164, %165 : vector<10x128xf32>
      %167 = vector.extract_strided_slice %135 {offsets = [20, 128], sizes = [10, 128], strides = [1, 1]} : vector<30x256xf32> to vector<10x128xf32>
      %168 = arith.mulf %166, %167 : vector<10x128xf32>
      %169 = arith.addf %159, %168 : vector<10x128xf32>
      %170 = arith.mulf %19, %27 : vector<10x128xf32>
      %171 = arith.addf %170, %169 : vector<10x128xf32>
      %172 = math.tanh %171 : vector<10x128xf32>
      %173 = arith.mulf %25, %172 : vector<10x128xf32>
      %c0_72 = arith.constant 0 : index
      %c0_73 = arith.constant 0 : index
      %174 = vector.load %arg8[%c0_72, %c0_73] : memref<10x256xf32, #tpu.memory_space<vmem>>, vector<10x128xf32>
      tpu.vector_store %arg8[%c0_72, %c0_73], %173 {strides = array<i32>} : memref<10x256xf32, #tpu.memory_space<vmem>>, vector<10x128xf32>,
      %c0_74 = arith.constant 0 : index
      %c128 = arith.constant 128 : index
      %175 = vector.load %arg8[%c0_74, %c128] : memref<10x256xf32, #tpu.memory_space<vmem>>, vector<10x128xf32>
      tpu.vector_store %arg8[%c0_74, %c128], %171 {strides = array<i32>} : memref<10x256xf32, #tpu.memory_space<vmem>>, vector<10x128xf32>,
      %c5_i32_75 = arith.constant 5 : i32
      %176 = arith.muli %7, %c5_i32_75 : i32
      %c0_i32_76 = arith.constant 0 : i32
      %177 = arith.addi %176, %c0_i32_76 : i32
      %178 = arith.index_cast %177 : i32 to index
      %179 = memref.load %arg0[%178] : memref<15xi32, #tpu.memory_space<smem>>
      %c0_77 = arith.constant 0 : index
      %c0_78 = arith.constant 0 : index
      %180 = vector.load %arg8[%c0_77, %c0_78] : memref<10x256xf32, #tpu.memory_space<vmem>>, vector<2x256xf32>
      %181 = arith.index_cast %179 : i32 to index
      %c0_79 = arith.constant 0 : index
      %c0_80 = arith.constant 0 : index
      %182 = vector.load %arg6[%181, %c0_79, %c0_80] : memref<10x2x256xf32, #tpu.memory_space<vmem>>, vector<1x2x256xf32>
      %183 = vector.shape_cast %182 : vector<1x2x256xf32> to vector<2x256xf32>
      %184 = vector.shape_cast %180 : vector<2x256xf32> to vector<1x2x256xf32>
      tpu.vector_store %arg6[%181, %c0_79, %c0_80], %184 {strides = array<i32>} : memref<10x2x256xf32, #tpu.memory_space<vmem>>, vector<1x2x256xf32>,
      %c1_i32_81 = arith.constant 1 : i32
      %185 = arith.addi %176, %c1_i32_81 : i32
      %186 = arith.index_cast %185 : i32 to index
      %187 = memref.load %arg0[%186] : memref<15xi32, #tpu.memory_space<smem>>
      %c2_82 = arith.constant 2 : index
      %c0_83 = arith.constant 0 : index
      %188 = vector.load %arg8[%c2_82, %c0_83] : memref<10x256xf32, #tpu.memory_space<vmem>>, vector<2x256xf32>
      %189 = arith.index_cast %187 : i32 to index
      %c0_84 = arith.constant 0 : index
      %c0_85 = arith.constant 0 : index
      %190 = vector.load %arg6[%189, %c0_84, %c0_85] : memref<10x2x256xf32, #tpu.memory_space<vmem>>, vector<1x2x256xf32>
      %191 = vector.shape_cast %190 : vector<1x2x256xf32> to vector<2x256xf32>
      %192 = vector.shape_cast %188 : vector<2x256xf32> to vector<1x2x256xf32>
      tpu.vector_store %arg6[%189, %c0_84, %c0_85], %192 {strides = array<i32>} : memref<10x2x256xf32, #tpu.memory_space<vmem>>, vector<1x2x256xf32>,
      %c2_i32_86 = arith.constant 2 : i32
      %193 = arith.addi %176, %c2_i32_86 : i32
      %194 = arith.index_cast %193 : i32 to index
      %195 = memref.load %arg0[%194] : memref<15xi32, #tpu.memory_space<smem>>
      %c4_87 = arith.constant 4 : index
      %c0_88 = arith.constant 0 : index
      %196 = vector.load %arg8[%c4_87, %c0_88] : memref<10x256xf32, #tpu.memory_space<vmem>>, vector<2x256xf32>
      %197 = arith.index_cast %195 : i32 to index
      %c0_89 = arith.constant 0 : index
      %c0_90 = arith.constant 0 : index
      %198 = vector.load %arg6[%197, %c0_89, %c0_90] : memref<10x2x256xf32, #tpu.memory_space<vmem>>, vector<1x2x256xf32>
      %199 = vector.shape_cast %198 : vector<1x2x256xf32> to vector<2x256xf32>
      %200 = vector.shape_cast %196 : vector<2x256xf32> to vector<1x2x256xf32>
      tpu.vector_store %arg6[%197, %c0_89, %c0_90], %200 {strides = array<i32>} : memref<10x2x256xf32, #tpu.memory_space<vmem>>, vector<1x2x256xf32>,
      %c3_i32_91 = arith.constant 3 : i32
      %201 = arith.addi %176, %c3_i32_91 : i32
      %202 = arith.index_cast %201 : i32 to index
      %203 = memref.load %arg0[%202] : memref<15xi32, #tpu.memory_space<smem>>
      %c6_92 = arith.constant 6 : index
      %c0_93 = arith.constant 0 : index
      %204 = vector.load %arg8[%c6_92, %c0_93] : memref<10x256xf32, #tpu.memory_space<vmem>>, vector<2x256xf32>
      %205 = arith.index_cast %203 : i32 to index
      %c0_94 = arith.constant 0 : index
      %c0_95 = arith.constant 0 : index
      %206 = vector.load %arg6[%205, %c0_94, %c0_95] : memref<10x2x256xf32, #tpu.memory_space<vmem>>, vector<1x2x256xf32>
      %207 = vector.shape_cast %206 : vector<1x2x256xf32> to vector<2x256xf32>
      %208 = vector.shape_cast %204 : vector<2x256xf32> to vector<1x2x256xf32>
      tpu.vector_store %arg6[%205, %c0_94, %c0_95], %208 {strides = array<i32>} : memref<10x2x256xf32, #tpu.memory_space<vmem>>, vector<1x2x256xf32>,
      %c4_i32_96 = arith.constant 4 : i32
      %209 = arith.addi %176, %c4_i32_96 : i32
      %210 = arith.index_cast %209 : i32 to index
      %211 = memref.load %arg0[%210] : memref<15xi32, #tpu.memory_space<smem>>
      %c8_97 = arith.constant 8 : index
      %c0_98 = arith.constant 0 : index
      %212 = vector.load %arg8[%c8_97, %c0_98] : memref<10x256xf32, #tpu.memory_space<vmem>>, vector<2x256xf32>
      %213 = arith.index_cast %211 : i32 to index
      %c0_99 = arith.constant 0 : index
      %c0_100 = arith.constant 0 : index
      %214 = vector.load %arg6[%213, %c0_99, %c0_100] : memref<10x2x256xf32, #tpu.memory_space<vmem>>, vector<1x2x256xf32>
      %215 = vector.shape_cast %214 : vector<1x2x256xf32> to vector<2x256xf32>
      %216 = vector.shape_cast %212 : vector<2x256xf32> to vector<1x2x256xf32>
      tpu.vector_store %arg6[%213, %c0_99, %c0_100], %216 {strides = array<i32>} : memref<10x2x256xf32, #tpu.memory_space<vmem>>, vector<1x2x256xf32>,
    }
    %c3_i32_4 = arith.constant 3 : i32
    return
  }
}

</mosaic_0001>

<bundles_post_ra>
// kernel: tpu_custom_call.1
= control target key start
LH: loop header
LB: loop body
LE: loop exit
PB: predicated region body
PF: predicated region fallthrough
CT: control target
= control target key end

     0   :  { %11 = vsyncpa [#allocation7], 0  ;;  %s1716_s0 = inlined_call_operand.vmem [shape: s32[15], index: 0, kind: input, shape index: {}]   ;;  %s1717_s1 = inlined_call_operand.vmem [shape: s32[45], index: 1, kind: input, shape index: {}]   ;;  %s1718_s2 = inlined_call_operand.vmem [shape: f32[3,10,128], index: 2, kind: input, shape index: {}]   ;;  %s1719_s3 = inlined_call_operand.hbm [shape: f32[128,512], index: 3, kind: input, shape index: {}]   ;;  %s1720_s4 = inlined_call_operand.vmem [shape: f32[1,512], index: 4, kind: input, shape index: {}]   ;;  %s1721_s5 = inlined_call_operand.hbm [shape: f32[128,128], index: 5, kind: input, shape index: {}]   ;;  %s1722_s6 = inlined_call_operand.hbm [shape: f32[10,2,256], index: 6, kind: output, shape index: {}]  }
   0x1   :  { %12 = vsyncpa [#allocation9], 0 }
   0x2   :  { %13 = vsyncpa [#allocation5], 0 }
   0x3   :  { %14 = vsyncpa [#allocation12], 0 }
   0x4   :  { %15 = vsyncpa [#allocation6], 0  ;;  %s22_s23 = sshll.u32 %s1716_s0, 4  ;;  %s32_s26 = sshll.u32 %s1717_s1, 4  ;;  %s23_s23 = int_to_ptr.vmem [resolvable:$true] %s22_s23  ;;  %s33_s26 = int_to_ptr.vmem [resolvable:$true] %s32_s26 }
   0x5   :  { %s1363_s27 = scalar_lea.vmem %s23_s23, 16  ;;  %p1368_p1 = scmp.lt.s32.totalorder %s23_s23, %s23_s23 }
   0x6   :  { %p1364_p0 = scmp.ne.s32.totalorder %s23_s23, %s1363_s27  ;;  %p1369_p2 = scmp.lt.s32.totalorder %s1363_s27, %s1363_s27 }
   0x8   :  { %p1370_p3 = por %p1369_p2, %p1368_p1 }
   0xa   :  { %p1371_p4 = pnand %p1370_p3, %p1364_p0 }
   0xc   :  { %1374 = shalt.err (!%p1371_p4)
}
   0xd   :  { %s1471_s28 = smov [#allocation4]   ;;  %s1375_s29 = scalar_lea.vmem %s33_s26, 16 }
   0xe   :  { %25 = dma.vmem_to_smem %s23_s23, 16, %s1471_s28, [#allocation7]  }
   0xf   :  { %p1376_p5 = scmp.ne.s32.totalorder %s33_s26, %s1375_s29  ;;  %p1380_p6 = scmp.lt.s32.totalorder %s33_s26, %s33_s26 }
  0x10   :  { %p1381_p7 = scmp.lt.s32.totalorder %s1375_s29, %s1375_s29 }
  0x12   :  { %p1382_p8 = por %p1381_p7, %p1380_p6 }
  0x14   :  { %p1383_p9 = pnand %p1382_p8, %p1376_p5 }
  0x16   :  { %1386 = shalt.err (!%p1383_p9)
}
  0x17   :  { %s1472_s0 = smov [#allocation8]   ;;  %s1473_s1 = smov [#allocation10]  }
  0x18   :  { %35 = dma.vmem_to_smem %s33_s26, 16, %s1472_s0, [#allocation9]  }
  0x19   :  { %s43_s30 = sshll.u32 %s1473_s1, 4  ;;  %s1387_s9 = scalar_lea.hbm %s1719_s3, 8192  ;;  %s44_s30 = int_to_ptr.vmem [resolvable:$true] %s43_s30 }
  0x1a   :  { %p1388_p10 = scmp.ne.s32.totalorder %s1719_s3, %s1387_s9  ;;  %p1391_p11 = scmp.lt.u32.totalorder %s1387_s9, %s1719_s3 }
  0x1c   :  { %p1393_p12 = pnand %p1391_p11, %p1388_p10 }
  0x1e   :  { %1396 = shalt.err (!%p1393_p12)
}
  0x1f   :  { %s1397_s14 = scalar_lea.vmem %s44_s30, 8192  ;;  %p1402_p0 = scmp.lt.s32.totalorder %s44_s30, %s44_s30 }
  0x20   :  { %p1398_p13 = scmp.ne.s32.totalorder %s44_s30, %s1397_s14  ;;  %p1403_p1 = scmp.lt.s32.totalorder %s1397_s14, %s1397_s14 }
  0x22   :  { %p1404_p2 = por %p1403_p1, %p1402_p0 }
  0x24   :  { %p1405_p3 = pnand %p1404_p2, %p1398_p13 }
  0x26   :  { %1408 = shalt.err (!%p1405_p3)
}
  0x27   :  { %s1474_s15 = smov 512   ;;  %s1475_s16 = smov 32  }
  0x28   :  { %49 = dma.hbm_to_vmem [thread:$0]  %s1719_s3, 8192, %s44_s30, [#allocation5], %s1474_s15, %s1474_s15, %s1475_s16  }
  0x29   :  { %s1476_s19 = smov [#allocation11]   ;;  %s1409_s23 = scalar_lea.hbm %s1721_s5, 2048 }
  0x2a   :  { %s57_s20 = sshll.u32 %s1476_s19, 4  ;;  %p1410_p4 = scmp.ne.s32.totalorder %s1721_s5, %s1409_s23  ;;  %s58_s20 = int_to_ptr.vmem [resolvable:$true] %s57_s20 }
  0x2b   :  { %p1413_p5 = scmp.lt.u32.totalorder %s1409_s23, %s1721_s5 }
  0x2d   :  { %p1415_p6 = pnand %p1413_p5, %p1410_p4 }
  0x2f   :  { %1418 = shalt.err (!%p1415_p6)
}
  0x30   :  { %s1419_s28 = scalar_lea.vmem %s58_s20, 2048  ;;  %p1424_p8 = scmp.lt.s32.totalorder %s58_s20, %s58_s20 }
  0x31   :  { %p1420_p7 = scmp.ne.s32.totalorder %s58_s20, %s1419_s28  ;;  %p1425_p9 = scmp.lt.s32.totalorder %s1419_s28, %s1419_s28 }
  0x33   :  { %p1426_p10 = por %p1425_p9, %p1424_p8 }
  0x35   :  { %p1427_p11 = pnand %p1426_p10, %p1420_p7 }
  0x37   :  { %1430 = shalt.err (!%p1427_p11)
}
  0x38   :  { %s1477_s3 = smov 128   ;;  %s1478_s29 = smov 8  }
  0x39   :  { %63 = dma.hbm_to_vmem [thread:$0]  %s1721_s5, 2048, %s58_s20, [#allocation12], %s1477_s3, %s1477_s3, %s1478_s29  }
  0x3a   :  { %1457 = dma.done.wait [#allocation7], 16  }
  0x3b   :  { %1458 = vsyncadd [#allocation7], 4294967280 }
  0x3c   :  { %1459 = dma.done.wait [#allocation9], 16  }
  0x3d   :  { %1460 = vsyncadd [#allocation9], 4294967280 }
  0x3e   :  { %1461 = dma.done.wait [#allocation5], 8192  }
  0x3f   :  { %1462 = vsyncadd [#allocation5], 4294959104 }
  0x40   :  { %1463 = dma.done.wait [#allocation12], 2048  }
  0x41   :  { %1464 = vsyncadd [#allocation12], 4294965248 }
  0x42   :  { %76 = sfence }
  0x43   :  { %v89_v0 = vlaneseq  ;;  %v1479_v1 = vmov 0.0   ;;  %v87_v3 = vld [vmem:[%s1720_s4] sm:$0xf]  ;;  %s1567_s7 = smov 0  }
  0x44   :  { %77 = vst [vmem:[#allocation13] sm:$0xf] %v1479_v1  ;;  %78 = vst [vmem:[#allocation13 + $0x4] sm:$0xf] %v1479_v1 }
  0x45   :  { %79 = vst [vmem:[#allocation13 + $0x8] sm:$0xf] %v1479_v1  ;;  %80 = vst [vmem:[#allocation13 + $0xc] sm:$0xf] %v1479_v1  ;;  %v1550_v2 = vshrl.u32 %v89_v0, 7 }
  0x46   :  { %81 = vst [vmem:[#allocation13 + $0x10] sm:$0xf] %v1479_v1  ;;  %82 = vst [vmem:[#allocation13 + $0x14] sm:$0xf] %v1479_v1 }
  0x47   :  { %83 = vst [vmem:[#allocation13 + $0x18] sm:$0xf] %v1479_v1  ;;  %84 = vst [vmem:[#allocation13 + $0x1c] sm:$0xf] %v1479_v1  ;;  %v91_v4 = vsub.s32 0, %v1550_v2  ;;  %v95_v5 = vsub.s32 1, %v1550_v2 }
  0x48   :  { %85 = vst [vmem:[#allocation13 + $0x20] sm:$0xf] %v1479_v1  ;;  %86 = vst [vmem:[#allocation13 + $0x24] sm:$0xf] %v1479_v1  ;;  %v99_v6 = vsub.s32 2, %v1550_v2  ;;  %v103_v7 = vsub.s32 3, %v1550_v2 }
  0x49   :  { %v1559_v8 = vrot.slane %v87_v3, %v91_v4  ;;  %v1561_v9 = vrot.slane %v87_v3, %v95_v5 }
  0x4a   :  { %v1563_v10 = vrot.slane %v87_v3, %v99_v6  ;;  %v1565_v11 = vrot.slane %v87_v3, %v103_v7 }
  0x4b LB: > { %v120_v12 = vld [vmem:[#allocation10 + $0x8] sm:$0xff]  ;;  %v122_v14 = vld [vmem:[#allocation10 + $0x18] sm:$0xff]  ;;  %v119_v17 = vld [vmem:[#allocation10] sm:$0xff]  ;;  %v1480_v19 = vmov 0.0   ;;  %s1575_s4 = smul.u32 15, %s1469_s7  ;;  %s1022_s11 = sshll.u32 %s1469_s7, 4  ;;  %s1469_s7 = sphi %s1567_s7, %s114_s7  }
  0x4c   : > { %v124_v13 = vld [vmem:[#allocation10 + $0x28] sm:$0xff]  ;;  %v126_v16 = vld [vmem:[#allocation10 + $0x38] sm:$0xff]  ;;  %v123_v18 = vld [vmem:[#allocation10 + $0x20] sm:$0xff]  ;;  %247 = vmatprep.mubr.f32.mxu0 %v1480_v19  ;;  %324 = vmatprep.mubr.f32.mxu1 %v1480_v19  ;;  %s1589_s16 = scalar_lea.vmem %s1718_s2, %s1022_s11  ;;  %vm784_vm0 = vcmask 1045504   ;;  %vm816_vm1 = vcmask 1043456  }
  0x4d   : > { %v1169_v15 = vpack.c.bf16 %v124_v13, %v120_v12  ;;  %v1201_v20 = vpack.c.bf16 %v126_v16, %v122_v14  ;;  %v1171_v21 = vpack.c.bf16 %v123_v18, %v119_v17  ;;  %v121_v22 = vld [vmem:[#allocation10 + $0x10] sm:$0xff]  ;;  %v128_v24 = vld [vmem:[#allocation10 + $0x48] sm:$0xff]  ;;  %v130_v27 = vld [vmem:[#allocation10 + $0x58] sm:$0xff]  ;;  %s1578_s8 = sld [smem:[#allocation8 + %s1575_s4]]  ;;  %s382_s9 = sadd.s32 1, %s1575_s4 }
  0x4e   : > { %v125_v23 = vld [vmem:[#allocation10 + $0x30] sm:$0xff]  ;;  %v132_v26 = vld [vmem:[#allocation10 + $0x68] sm:$0xff]  ;;  %v134_v28 = vld [vmem:[#allocation10 + $0x78] sm:$0xff]  ;;  %s1581_s10 = sld [smem:[#allocation8 + %s382_s9]]  ;;  %s402_s13 = sadd.s32 2, %s1575_s4 }
  0x4f   : > { %1170 = vmatprep.subr.bf16.mxu0 %v1169_v15  ;;  %v1203_v25 = vpack.c.bf16 %v125_v23, %v121_v22  ;;  %1202 = vmatprep.subr.bf16.mxu1 %v1201_v20  ;;  %v1173_v29 = vpack.c.bf16 %v132_v26, %v128_v24  ;;  %v1205_v30 = vpack.c.bf16 %v134_v28, %v130_v27  ;;  %v127_v31 = vld [vmem:[#allocation10 + $0x40] sm:$0xff]  ;;  %v129_v33 = vld [vmem:[#allocation10 + $0x50] sm:$0xff]  ;;  %v136_v36 = vld [vmem:[#allocation10 + $0x88] sm:$0xff]  ;;  %s1592_s18 = sld [smem:[#allocation8 + %s402_s13]]  ;;  %s421_s19 = sadd.s32 3, %s1575_s4 }
  0x50   : > { %1172 = vmatpush1.bf16.msra.mxu0 %v1171_v21  ;;  %v131_v32 = vld [vmem:[#allocation10 + $0x60] sm:$0xff]  ;;  %v133_v35 = vld [vmem:[#allocation10 + $0x70] sm:$0xff]  ;;  %v140_v37 = vld [vmem:[#allocation10 + $0xa8] sm:$0xff]  ;;  %s519_s20 = sadd.s32 8, %s1575_s4  ;;  %s1596_s21 = sld [smem:[#allocation8 + %s421_s19]] }
  0x51   : > { %1204 = vmatpush1.bf16.msra.mxu1 %v1203_v25  ;;  %v1175_v34 = vpack.c.bf16 %v131_v32, %v127_v31  ;;  %1174 = vmatprep.subr.bf16.mxu0 %v1173_v29  ;;  %v1207_v38 = vpack.c.bf16 %v133_v35, %v129_v33  ;;  %v1177_v39 = vpack.c.bf16 %v140_v37, %v136_v36  ;;  %v138_v40 = vld [vmem:[#allocation10 + $0x98] sm:$0xff]  ;;  %v135_v42 = vld [vmem:[#allocation10 + $0x80] sm:$0xff]  ;;  %v137_v45 = vld [vmem:[#allocation10 + $0x90] sm:$0xff]  ;;  %v1481_v29 = vmov 1983009808   ;;  %s1598_s22 = sld [smem:[#allocation8 + %s519_s20]] }
  0x52   : > { %1206 = vmatprep.subr.bf16.mxu1 %v1205_v30  ;;  %v142_v41 = vld [vmem:[#allocation10 + $0xb8] sm:$0xff]  ;;  %v139_v44 = vld [vmem:[#allocation10 + $0xa0] sm:$0xff]  ;;  %v141_v46 = vld [vmem:[#allocation10 + $0xb0] sm:$0xff]  ;;  %v391_v30 = vunpack.c.l.s4 %v1481_v29  ;;  %s538_s23 = sadd.s32 9, %s1575_s4  ;;  %s558_s24 = sadd.s32 10, %s1575_s4 }
  0x53   : > { %v1209_v43 = vpack.c.bf16 %v142_v41, %v138_v40  ;;  %v1179_v47 = vpack.c.bf16 %v139_v44, %v135_v42  ;;  %v144_v48 = vld [vmem:[#allocation10 + $0xc8] sm:$0xff]  ;;  %v146_v50 = vld [vmem:[#allocation10 + $0xd8] sm:$0xff]  ;;  %v1211_v51 = vpack.c.bf16 %v141_v46, %v137_v45  ;;  %v143_v54 = vld [vmem:[#allocation10 + $0xc0] sm:$0xff]  ;;  %s1091_s12 = sshll.u32 %s1578_s8, 2  ;;  %s1602_s25 = sld [smem:[#allocation8 + %s538_s23]] }
  0x54   : > { %1176 = vmatpush1.bf16.msra.mxu0 %v1175_v34  ;;  %v148_v49 = vld [vmem:[#allocation10 + $0xe8] sm:$0xff]  ;;  %v150_v53 = vld [vmem:[#allocation10 + $0xf8] sm:$0xff]  ;;  %v147_v55 = vld [vmem:[#allocation10 + $0xe0] sm:$0xff]  ;;  %s1092_s17 = sshll.u32 %s1581_s10, 2  ;;  %s1604_s26 = sld [smem:[#allocation8 + %s558_s24]] }
  0x55   : > { %1208 = vmatpush1.bf16.msra.mxu1 %v1207_v38  ;;  %1178 = vmatprep.subr.bf16.mxu0 %v1177_v39  ;;  %v1181_v52 = vpack.c.bf16 %v148_v49, %v144_v48  ;;  %v1213_v56 = vpack.c.bf16 %v150_v53, %v146_v50  ;;  %v145_v57 = vld [vmem:[#allocation10 + $0xd0] sm:$0xff]  ;;  %v152_v59 = vld [vmem:[#allocation10 + $0x108] sm:$0xff]  ;;  %v154_v61 = vld [vmem:[#allocation10 + $0x118] sm:$0xff]  ;;  %v1183_v63 = vpack.c.bf16 %v147_v55, %v143_v54  ;;  %s577_s27 = sadd.s32 11, %s1575_s4  ;;  %s441_s28 = sadd.s32 4, %s1575_s4 }
  0x56   : > { %1210 = vmatprep.subr.bf16.mxu1 %v1209_v43  ;;  %v149_v58 = vld [vmem:[#allocation10 + $0xf0] sm:$0xff]  ;;  %v156_v60 = vld [vmem:[#allocation10 + $0x128] sm:$0xff]  ;;  %v158_v62 = vld [vmem:[#allocation10 + $0x138] sm:$0xff]  ;;  %v392_v43 = vunpack.c.0.s8 %v391_v30  ;;  %s1093_s3 = sshll.u32 %s1592_s18, 2  ;;  %s1609_s29 = sld [smem:[#allocation8 + %s577_s27]] }
  0x57   : > { %v1215_v0 = vpack.c.bf16 %v149_v58, %v145_v57  ;;  %v1185_v1 = vpack.c.bf16 %v156_v60, %v152_v59  ;;  %v151_v3 = vld [vmem:[#allocation10 + $0x100] sm:$0xff]  ;;  %v153_v5 = vld [vmem:[#allocation10 + $0x110] sm:$0xff]  ;;  %v1217_v6 = vpack.c.bf16 %v158_v62, %v154_v61  ;;  %v160_v12 = vld [vmem:[#allocation10 + $0x148] sm:$0xff]  ;;  %s1611_s0 = sld [smem:[#allocation8 + %s441_s28]]  ;;  %s1094_s1 = sshll.u32 %s1596_s21, 2 }
  0x58   : > { %1180 = vmatpush1.bf16.msra.mxu0 %v1179_v47  ;;  %v155_v4 = vld [vmem:[#allocation10 + $0x120] sm:$0xff]  ;;  %v157_v7 = vld [vmem:[#allocation10 + $0x130] sm:$0xff]  ;;  %v164_v13 = vld [vmem:[#allocation10 + $0x168] sm:$0xff]  ;;  %s1099_s5 = sshll.u32 %s1598_s22, 2  ;;  %s367_s30 = scalar_lea.vmem [#allocation13], %s1091_s12  ;;  %v1620_v57 = vsub.s32 %v392_v43, %v1550_v2 }
  0x59   : > { %1212 = vmatpush1.bf16.msra.mxu1 %v1211_v51  ;;  %1182 = vmatprep.subr.bf16.mxu0 %v1181_v52  ;;  %v162_v14 = vld [vmem:[#allocation10 + $0x158] sm:$0xff]  ;;  %v1187_v16 = vpack.c.bf16 %v155_v4, %v151_v3  ;;  %v1219_v17 = vpack.c.bf16 %v157_v7, %v153_v5  ;;  %v1189_v18 = vpack.c.bf16 %v164_v13, %v160_v12  ;;  %v159_v20 = vld [vmem:[#allocation10 + $0x140] sm:$0xff]  ;;  %v161_v22 = vld [vmem:[#allocation10 + $0x150] sm:$0xff]  ;;  %s1100_s9 = sshll.u32 %s1602_s25, 2  ;;  %s386_s11 = scalar_lea.vmem [#allocation13], %s1092_s17 }
  0x5a   : > { %1214 = vmatprep.subr.bf16.mxu1 %v1213_v56  ;;  %v166_v15 = vld [vmem:[#allocation10 + $0x178] sm:$0xff]  ;;  %v163_v21 = vld [vmem:[#allocation10 + $0x160] sm:$0xff]  ;;  %v165_v24 = vld [vmem:[#allocation10 + $0x170] sm:$0xff]  ;;  %s425_s13 = scalar_lea.vmem [#allocation13], %s1094_s1  ;;  %s406_s8 = scalar_lea.vmem [#allocation13], %s1093_s3 }
  0x5b   : > { %v1221_v23 = vpack.c.bf16 %v166_v15, %v162_v14  ;;  %v168_v25 = vld [vmem:[#allocation10 + $0x188] sm:$0xff]  ;;  %v170_v27 = vld [vmem:[#allocation10 + $0x198] sm:$0xff]  ;;  %v1191_v31 = vpack.c.bf16 %v163_v21, %v159_v20  ;;  %v1223_v32 = vpack.c.bf16 %v165_v24, %v161_v22  ;;  %v167_v34 = vld [vmem:[#allocation10 + $0x180] sm:$0xff]  ;;  %s523_s10 = scalar_lea.vmem [#allocation13], %s1099_s5  ;;  %s1101_s12 = sshll.u32 %s1604_s26, 2 }
  0x5c   : > { %1184 = vmatpush1.bf16.msra.mxu0 %v1183_v63  ;;  %v172_v26 = vld [vmem:[#allocation10 + $0x1a8] sm:$0xff]  ;;  %v174_v28 = vld [vmem:[#allocation10 + $0x1b8] sm:$0xff]  ;;  %v171_v35 = vld [vmem:[#allocation10 + $0x1a0] sm:$0xff]  ;;  %s542_s14 = scalar_lea.vmem [#allocation13], %s1100_s9  ;;  %s1102_s15 = sshll.u32 %s1609_s29, 2 }
  0x5d   : > { %1216 = vmatpush1.bf16.msra.mxu1 %v1215_v0  ;;  %1186 = vmatprep.subr.bf16.mxu0 %v1185_v1  ;;  %v1193_v33 = vpack.c.bf16 %v172_v26, %v168_v25  ;;  %v169_v36 = vld [vmem:[#allocation10 + $0x190] sm:$0xff]  ;;  %v1225_v37 = vpack.c.bf16 %v174_v28, %v170_v27  ;;  %v176_v39 = vld [vmem:[#allocation10 + $0x1c8] sm:$0xff]  ;;  %v178_v41 = vld [vmem:[#allocation10 + $0x1d8] sm:$0xff]  ;;  %v1195_v44 = vpack.c.bf16 %v171_v35, %v167_v34  ;;  %s562_s17 = scalar_lea.vmem [#allocation13], %s1101_s12  ;;  %s1095_s18 = sshll.u32 %s1611_s0, 2 }
  0x5e   : > { %1218 = vmatprep.subr.bf16.mxu1 %v1217_v6  ;;  %v173_v38 = vld [vmem:[#allocation10 + $0x1b0] sm:$0xff]  ;;  %v180_v40 = vld [vmem:[#allocation10 + $0x1e8] sm:$0xff]  ;;  %v182_v42 = vld [vmem:[#allocation10 + $0x1f8] sm:$0xff]  ;;  %s581_s19 = scalar_lea.vmem [#allocation13], %s1102_s15  ;;  %s460_s20 = sadd.s32 5, %s1575_s4 }
  0x5f   : > { %v1227_v45 = vpack.c.bf16 %v173_v38, %v169_v36  ;;  %v1197_v46 = vpack.c.bf16 %v180_v40, %v176_v39  ;;  %v175_v47 = vld [vmem:[#allocation10 + $0x1c0] sm:$0xff]  ;;  %v177_v49 = vld [vmem:[#allocation10 + $0x1d0] sm:$0xff]  ;;  %v1229_v50 = vpack.c.bf16 %v182_v42, %v178_v41  ;;  %v664_v53 = vld [vmem:[#allocation11 + $0x8] sm:$0xff]  ;;  %s445_s21 = scalar_lea.vmem [#allocation13], %s1095_s18  ;;  %s1643_s22 = sld [smem:[#allocation8 + %s460_s20]] }
  0x60   : > { %1188 = vmatpush1.bf16.msra.mxu0 %v1187_v16  ;;  %v179_v48 = vld [vmem:[#allocation10 + $0x1e0] sm:$0xff]  ;;  %v181_v51 = vld [vmem:[#allocation10 + $0x1f0] sm:$0xff]  ;;  %v666_v55 = vld [vmem:[#allocation11 + $0x18] sm:$0xff]  ;;  %s480_s23 = sadd.s32 6, %s1575_s4  ;;  %s499_s25 = sadd.s32 7, %s1575_s4 }
  0x61   : > { %1220 = vmatpush1.bf16.msra.mxu1 %v1219_v17  ;;  %1190 = vmatprep.subr.bf16.mxu0 %v1189_v18  ;;  %v663_v52 = vld [vmem:[#allocation11] sm:$0xff]  ;;  %v665_v54 = vld [vmem:[#allocation11 + $0x10] sm:$0xff]  ;;  %v1199_v58 = vpack.c.bf16 %v179_v48, %v175_v47  ;;  %v1231_v60 = vpack.c.bf16 %v181_v51, %v177_v49  ;;  %v668_v13 = vld [vmem:[#allocation11 + $0x28] sm:$0xff]  ;;  %s1648_s24 = sld [smem:[#allocation8 + %s480_s23]]  ;;  %s597_s27 = sadd.s32 12, %s1575_s4 }
  0x62   : > { %1222 = vmatprep.subr.bf16.mxu1 %v1221_v23  ;;  %v1617_v56 = vld.sshfl [vmem:[%s367_s30] sm:$0x33 pattern:$0x76325410]  ;;  %v1233_v61 = vpack.c.bf16 %v664_v53, %v663_v52  ;;  %v1237_v7 = vpack.c.bf16 %v666_v55, %v665_v54  ;;  %v118_v24 = vld [vmem:[%s1589_s16 + $0x8] sm:$0x3] }
  0x63   : > { %380 = vst [vmem:[#allocation2] sm:$0x3] %v1617_v56  ;;  %v1303_v59 = vld [vmem:[%s386_s11] ss:$0 sps:$4 sm:$0xff]   ;;  %s1652_s26 = sld [smem:[#allocation8 + %s499_s25]]  ;;  %s616_s3 = sadd.s32 13, %s1575_s4 }
  0x64   : > { %1192 = vmatpush1.bf16.msra.mxu0 %v1191_v31  ;;  %v1035_v62 = vld.sshfl [vmem:[%s406_s8] sm:$0x33 pattern:$0x76325410]  ;;  %v396_v1 = vrot.slane %v1303_v59, %v1620_v57  ;;  %s1655_s28 = sld [smem:[#allocation8 + %s597_s27]]  ;;  %v669_v27 = vld [vmem:[#allocation11 + $0x30] sm:$0xff] }
  0x65   : > { %1224 = vmatpush1.bf16.msra.mxu1 %v1223_v32  ;;  %1194 = vmatprep.subr.bf16.mxu0 %v1193_v33  ;;  %v1304_v63 = vld [vmem:[%s425_s13] ss:$0 sps:$4 sm:$0xff]   ;;  %1032 = vst.sshfl [vmem:[#allocation2] sm:$0x30 pattern:$0x76325410] %v1303_v59  ;;  %v416_v3 = vcombine.low %v1035_v62, %v1035_v62 }
  0x66   : > { %1226 = vmatprep.subr.bf16.mxu1 %v1225_v37  ;;  %v117_v0 = vld [vmem:[%s1589_s16] sm:$0xff]  ;;  %420 = vst [vmem:[#allocation2 + $0x8] sm:$0x30] %v1035_v62  ;;  %v435_v5 = vrot.slane %v1304_v63, %v1620_v57  ;;  %v397_v14 = vcombine.high %v396_v1, %v396_v1  ;;  %v670_v28 = vld [vmem:[#allocation11 + $0x38] sm:$0xff]  ;;  %s1659_s29 = sld [smem:[#allocation8 + %s616_s3]]  ;;  %s636_s16 = sadd.s32 14, %s1575_s4 }
  0x67   : > { %v1632_v4 = vld.sshfl [vmem:[%s523_s10] sm:$0x33 pattern:$0x76325410]  ;;  %419 = vst [vmem:[#allocation2] sm:$0x30] %v416_v3  ;;  %v1245_v29 = vpack.c.bf16 %v670_v28, %v669_v27 }
  0x68   : > { %1196 = vmatpush1.bf16.msra.mxu0 %v1195_v44  ;;  %1038 = vst.sshfl [vmem:[#allocation2 + $0x8] sm:$0xc0 pattern:$0x76325410] %v1304_v63  ;;  %536 = vst [vmem:[#allocation2 + $0x20] sm:$0x3] %v1632_v4  ;;  %v436_v16 = vcombine.low %v435_v5, %v435_v5  ;;  %v377_v63 = vcombine.high %v1617_v56, %v1617_v56 }
  0x69   : > { %1228 = vmatpush1.bf16.msra.mxu1 %v1227_v45  ;;  %1198 = vmatprep.subr.bf16.mxu0 %v1197_v46  ;;  %v1305_v6 = vld [vmem:[%s542_s14] ss:$0 sps:$4 sm:$0xff]   ;;  %401 = vst [vmem:[#allocation2 + $0x8] sm:$0xc] %v397_v14  ;;  %s1663_s0 = sld [smem:[#allocation8 + %s636_s16]]  ;;  %s1096_s1 = sshll.u32 %s1643_s22, 2 }
  0x6a   : > { %1230 = vmatprep.subr.bf16.mxu1 %v1229_v50  ;;  %v667_v12 = vld [vmem:[#allocation11 + $0x20] sm:$0xff]  ;;  %v552_v17 = vrot.slane %v1305_v6, %v1620_v57  ;;  %1056 = vst.sshfl [vmem:[#allocation2 + $0x20] sm:$0x30 pattern:$0x76325410] %v1305_v6  ;;  %v672_v31 = vld [vmem:[#allocation11 + $0x48] sm:$0xff] }
  0x6b   : > { %v1059_v15 = vld.sshfl [vmem:[%s562_s17] sm:$0x33 pattern:$0x76325410]  ;;  %439 = vst [vmem:[#allocation2] sm:$0xc0] %v436_v16  ;;  %v1241_v25 = vpack.c.bf16 %v668_v13, %v667_v12 }
  0x6c   : > { %1200 = vmatpush1.bf16.msra.mxu0 %v1199_v58  ;;  %v572_v18 = vcombine.low %v1059_v15, %v1059_v15  ;;  %v1306_v20 = vld [vmem:[%s581_s19] ss:$0 sps:$4 sm:$0xff]   ;;  %576 = vst [vmem:[#allocation2 + $0x28] sm:$0x30] %v1059_v15  ;;  %v553_v22 = vcombine.high %v552_v17, %v552_v17  ;;  %s1097_s5 = sshll.u32 %s1648_s24, 2  ;;  %s464_s4 = scalar_lea.vmem [#allocation13], %s1096_s1 }
  0x6d   : > { %1232 = vmatpush1.bf16.msra.mxu1 %v1231_v60  ;;  %1234 = vmatprep.subr.bf16.mxu0 %v1233_v61  ;;  %v1641_v21 = vld.sshfl [vmem:[%s445_s21] sm:$0x33 pattern:$0x76325410]  ;;  %v591_v23 = vrot.slane %v1306_v20, %v1620_v57  ;;  %s484_s30 = scalar_lea.vmem [#allocation13], %s1097_s5  ;;  %s1098_s9 = sshll.u32 %s1652_s26, 2 }
  0x6e   : > { %1265 = vmatprep.subr.bf16.mxu1 %v1233_v61  ;;  %575 = vst [vmem:[#allocation2 + $0x20] sm:$0x30] %v572_v18  ;;  %1062 = vst.sshfl [vmem:[#allocation2 + $0x28] sm:$0xc0 pattern:$0x76325410] %v1306_v20 }
  0x6f   : > { %248 = vmatmul.mubr.f32.vlgmr.msra.gmra.mrb[0].mxu0 %v117_v0  ;;  %458 = vst [vmem:[#allocation2 + $0x10] sm:$0x3] %v1641_v21  ;;  %557 = vst [vmem:[#allocation2 + $0x28] sm:$0xc] %v553_v22  ;;  %v592_v26 = vcombine.low %v591_v23, %v591_v23  ;;  %v671_v30 = vld [vmem:[#allocation11 + $0x40] sm:$0xff]  ;;  %s1103_s11 = sshll.u32 %s1655_s28, 2 }
  0x70   : > { %325 = vmatmul.mubr.f32.vlgmr.msra.gmra.mrb[0].mxu1 %v117_v0  ;;  %1236 = vmatpush3.bf16.msra.mxu0 %v1233_v61  ;;  %v1307_v33 = vld [vmem:[%s464_s4] ss:$0 sps:$4 sm:$0xff]   ;;  %v673_v34 = vld [vmem:[#allocation11 + $0x50] sm:$0xff]  ;;  %v674_v35 = vld [vmem:[#allocation11 + $0x58] sm:$0xff]  ;;  %v1249_v38 = vpack.c.bf16 %v672_v31, %v671_v30  ;;  %s503_s13 = scalar_lea.vmem [#allocation13], %s1098_s9  ;;  %s1104_s8 = sshll.u32 %s1659_s29, 2  ;;  %v533_v0 = vcombine.high %v1632_v4, %v1632_v4 }
  0x71   : > { %1273 = vmatpush3.bf16.msra.mxu1 %v1233_v61  ;;  %1238 = vmatprep.subr.bf16.mxu0 %v1237_v7  ;;  %595 = vst [vmem:[#allocation2 + $0x20] sm:$0xc0] %v592_v26  ;;  %v474_v36 = vrot.slane %v1307_v33, %v1620_v57  ;;  %1044 = vst.sshfl [vmem:[#allocation2 + $0x10] sm:$0x30 pattern:$0x76325410] %v1307_v33  ;;  %v1253_v45 = vpack.c.bf16 %v674_v35, %v673_v34 }
  0x72   : > { %1266 = vmatprep.subr.bf16.mxu1 %v1237_v7  ;;  %253 = vmatprep.mubr.f32.mxu0 %v1480_v19  ;;  %v655_v32 = vld [vmem:[#allocation2] sm:$0xff]  ;;  %s1105_s10 = sshll.u32 %s1663_s0, 2  ;;  %s601_s12 = scalar_lea.vmem [#allocation13], %s1103_s11  ;;  %v676_v51 = vld [vmem:[#allocation11 + $0x68] sm:$0xff]  ;;  %v677_v54 = vld [vmem:[#allocation11 + $0x70] sm:$0xff]  ;;  %v455_v61 = vcombine.high %v1641_v21, %v1641_v21 }
  0x73   : > { %254 = vmatmul.mubr.f32.gmra.mrb[2].mxu0 %v118_v24  ;;  %330 = vmatprep.mubr.f32.mxu1 %v1480_v19  ;;  %v1047_v19 = vld.sshfl [vmem:[%s484_s30] sm:$0x33 pattern:$0x76325410]  ;;  %v475_v41 = vcombine.high %v474_v36, %v474_v36  ;;  %s620_s14 = scalar_lea.vmem [#allocation13], %s1104_s8  ;;  %s640_s15 = scalar_lea.vmem [#allocation13], %s1105_s10 }
  0x74   : > { %1240 = vmatpush3.bf16.msra.mxu0 %v1237_v7  ;;  %331 = vmatmul.mubr.f32.gmra.mrb[2].mxu1 %v118_v24  ;;  %v494_v37 = vcombine.low %v1047_v19, %v1047_v19  ;;  %498 = vst [vmem:[#allocation2 + $0x18] sm:$0x30] %v1047_v19  ;;  %v1308_v39 = vld [vmem:[%s503_s13] ss:$0 sps:$4 sm:$0xff]   ;;  %v678_v55 = vld [vmem:[#allocation11 + $0x78] sm:$0xff]  ;;  %s858_s17 = smul.u32 5, %s1469_s7 }
  0x75   : > { %1274 = vmatpush3.bf16.msra.mxu1 %v1237_v7  ;;  %1242 = vmatprep.subr.bf16.mxu0 %v1241_v25  ;;  %v1065_v42 = vld.sshfl [vmem:[%s601_s12] sm:$0x33 pattern:$0x76325410]  ;;  %v513_v43 = vrot.slane %v1308_v39, %v1620_v57  ;;  %479 = vst [vmem:[#allocation2 + $0x18] sm:$0xc] %v475_v41  ;;  %v1261_v58 = vpack.c.bf16 %v678_v55, %v677_v54 }
  0x76   : > { %1267 = vmatprep.subr.bf16.mxu1 %v1241_v25  ;;  %1163 = vmatprep.mubr.f32.mxu0 %v655_v32  ;;  %497 = vst [vmem:[#allocation2 + $0x10] sm:$0x30] %v494_v37  ;;  %1050 = vst.sshfl [vmem:[#allocation2 + $0x18] sm:$0xc0 pattern:$0x76325410] %v1308_v39  ;;  %v611_v62 = vcombine.high %v1065_v42, %v1065_v42 }
  0x77   : > { %614 = vst [vmem:[#allocation2 + $0x30] sm:$0x3] %v1065_v42  ;;  %v1309_v44 = vld [vmem:[%s620_s14] ss:$0 sps:$4 sm:$0xff]   ;;  %v514_v47 = vcombine.low %v513_v43, %v513_v43  ;;  %459 = vst [vmem:[#allocation2 + $0x18] sm:$0x3] %v455_v61 }
  0x78   : > { %1244 = vmatpush3.bf16.msra.mxu0 %v1241_v25  ;;  %v659_v40 = vld [vmem:[#allocation2 + $0x20] sm:$0xff]  ;;  %v630_v48 = vrot.slane %v1309_v44, %v1620_v57  ;;  %1068 = vst.sshfl [vmem:[#allocation2 + $0x30] sm:$0x30 pattern:$0x76325410] %v1309_v44  ;;  %s859_s18 = sld [smem:[#allocation4 + %s858_s17]] }
  0x79   : > { %1275 = vmatpush3.bf16.msra.mxu1 %v1241_v25  ;;  %1246 = vmatprep.subr.bf16.mxu0 %v1245_v29  ;;  %v1071_v46 = vld.sshfl [vmem:[%s640_s15] sm:$0x33 pattern:$0x76325410]  ;;  %517 = vst [vmem:[#allocation2 + $0x10] sm:$0xc0] %v514_v47 }
  0x7a   : > { %1268 = vmatprep.subr.bf16.mxu1 %v1245_v29  ;;  %1166 = vmatprep.mubr.f32.mxu1 %v659_v40  ;;  %v650_v49 = vcombine.low %v1071_v46, %v1071_v46  ;;  %654 = vst [vmem:[#allocation2 + $0x38] sm:$0x30] %v1071_v46  ;;  %v675_v50 = vld [vmem:[#allocation11 + $0x60] sm:$0xff]  ;;  %v631_v52 = vcombine.high %v630_v48, %v630_v48  ;;  %615 = vst [vmem:[#allocation2 + $0x38] sm:$0x3] %v611_v62  ;;  %s877_s19 = sadd.s32 1, %s858_s17 }
  0x7b   : > { %v1257_v53 = vpack.c.bf16 %v676_v51, %v675_v50  ;;  %381 = vst [vmem:[#allocation2 + $0x8] sm:$0x3] %v377_v63  ;;  %537 = vst [vmem:[#allocation2 + $0x28] sm:$0x3] %v533_v0  ;;  %s897_s20 = sadd.s32 2, %s858_s17  ;;  %s916_s21 = sadd.s32 3, %s858_s17 }
  0x7c   : > { %1248 = vmatpush3.bf16.msra.mxu0 %v1245_v29  ;;  %653 = vst [vmem:[#allocation2 + $0x30] sm:$0x30] %v650_v49  ;;  %635 = vst [vmem:[#allocation2 + $0x38] sm:$0xc] %v631_v52  ;;  %s878_s22 = sld [smem:[#allocation4 + %s877_s19]]  ;;  %s936_s23 = sadd.s32 4, %s858_s17 }
  0x7d   : > { %1276 = vmatpush3.bf16.msra.mxu1 %v1245_v29  ;;  %1250 = vmatprep.subr.bf16.mxu0 %v1249_v38  ;;  %s898_s24 = sld [smem:[#allocation4 + %s897_s20]]  ;;  %s114_s7 = sadd.s32 1, %s1469_s7  }
  0x7e   : > { %1269 = vmatprep.subr.bf16.mxu1 %v1249_v38  ;;  %s917_s25 = sld [smem:[#allocation4 + %s916_s21]]  ;;  %s1106_s26 = sshll.u32 %s859_s18, 2 }
  0x7f   : > { %s937_s27 = sld [smem:[#allocation4 + %s936_s23]]  ;;  %s875_s29 = scalar_lea.vmem [#allocation13], %s1106_s26 }
  0x80   : > { %1252 = vmatpush3.bf16.msra.mxu0 %v1249_v38  ;;  %v657_v59 = vld [vmem:[#allocation2 + $0x10] sm:$0xff]  ;;  %p111_p12 = scmp.ge.s32.totalorder %s114_s7, 3  }
  0x81   : > { %1277 = vmatpush3.bf16.msra.mxu1 %v1249_v38  ;;  %1254 = vmatprep.subr.bf16.mxu0 %v1253_v45  ;;  %s1482_s9 = smov (%p111_p12), [#allocation13]  }
  0x82   : > { %1270 = vmatprep.subr.bf16.mxu1 %v1253_v45  ;;  %s1107_s28 = sshll.u32 %s878_s22, 2  ;;  %s960_s11 = sshll.u32 (%p111_p12), %s1482_s9, 4  ;;  %s961_s11 = int_to_ptr.vmem [resolvable:$true] %s960_s11 }
  0x83   : > { %v661_v60 = vld [vmem:[#allocation2 + $0x30] sm:$0x3f]  ;;  %s1108_s3 = sshll.u32 %s898_s24, 2  ;;  %s895_s1 = scalar_lea.vmem [#allocation13], %s1107_s28 }
  0x84   : > { %1256 = vmatpush3.bf16.msra.mxu0 %v1253_v45  ;;  %s1109_s16 = sshll.u32 %s917_s25, 2  ;;  %s914_s5 = scalar_lea.vmem [#allocation13], %s1108_s3 }
  0x85   : > { %1278 = vmatpush3.bf16.msra.mxu1 %v1253_v45  ;;  %1258 = vmatprep.subr.bf16.mxu0 %v1257_v53  ;;  %s1110_s0 = sshll.u32 %s937_s27, 2  ;;  %s934_s4 = scalar_lea.vmem [#allocation13], %s1109_s16 }
  0x86   : > { %1271 = vmatprep.subr.bf16.mxu1 %v1257_v53  ;;  %s953_s30 = scalar_lea.vmem [#allocation13], %s1110_s0  ;;  %s1431_s13 = scalar_lea.vmem (%p111_p12), %s961_s11, 640 }
  0x87   :  { %p1432_p13 = scmp.ne.s32.totalorder (%p111_p12), %s961_s11, %s1431_s13  ;;  %p1436_p0 = scmp.lt.s32.totalorder (%p111_p12), %s961_s11, %s961_s11 }
  0x88   : > { %1260 = vmatpush3.bf16.msra.mxu0 %v1257_v53  ;;  %p1437_p1 = scmp.lt.s32.totalorder (%p111_p12), %s1431_s13, %s1431_s13 }
  0x89   : > { %1279 = vmatpush3.bf16.msra.mxu1 %v1257_v53  ;;  %1262 = vmatprep.subr.bf16.mxu0 %v1261_v58 }
  0x8a   : > { %1272 = vmatprep.subr.bf16.mxu1 %v1261_v58  ;;  %p1438_p2 = por (%p111_p12), %p1437_p1, %p1436_p0 }
  0x8c   : > { %1264 = vmatpush3.bf16.msra.mxu0 %v1261_v58  ;;  %p1439_p3 = pnand (%p111_p12), %p1438_p2, %p1432_p13 }
  0x8d   : > { %1280 = vmatpush3.bf16.msra.mxu1 %v1261_v58 }
  0x8f   : > { %1164 = vmatmul.mubr.f32.vlgmr.msra.gmra.mrb[4].mxu0 %v657_v59 }
  0x90   : > { %1167 = vmatmul.mubr.f32.vlgmr.msra.gmra.mrb[4].mxu1 %v661_v60 }
 0x142   : > { %v249_v1 = vpop.f32.mrb[0].mxu0 }
 0x143   : > { %v250_v3 = vadd.f32 %v249_v1, %v1559_v8  ;;  %v326_v5 = vpop.f32.mrb[0].mxu1  ;;  %v251_v6 = vpop.f32.mrb[1].mxu0 }
 0x144   : > { %v328_v7 = vpop.f32.mrb[1].mxu1  ;;  %v327_v4 = vadd.f32 %v326_v5, %v1563_v10  ;;  %v252_v53 = vadd.f32 %v251_v6, %v1561_v9 }
 0x145   : > { %v1023_v12 = vmul.f32 -1.442695, %v250_v3  ;;  %v329_v30 = vadd.f32 %v328_v7, %v1565_v11 }
 0x146   : > { %v255_v13 = vpop.f32.mrb[2].mxu0  ;;  %v1025_v55 = vmul.f32 -1.442695, %v252_v53 }
 0x147   : > { %1315 = vpow2.f32 %v1023_v12  ;;  %v256_v14 = vadd.f32 %v255_v13, %v1559_v8  ;;  %v332_v15 = vpop.f32.mrb[2].mxu1  ;;  %v257_v56 = vpop.f32.mrb[3].mxu0  ;;  %v658_v13 = vld [vmem:[#allocation2 + $0x18] sm:$0xff] }
 0x148   : > { %v334_v16 = vpop.f32.mrb[3].mxu1  ;;  %v333_v21 = vadd.f32 %v332_v15, %v1563_v10  ;;  %v258_v54 = vadd.f32 %v257_v56, %v1561_v9  ;;  %v662_v15 = vld [vmem:[#allocation2 + $0x38] sm:$0x3f] }
 0x149   : > { %v1024_v17 = vmul.f32 -1.442695, %v256_v14  ;;  %v335_v28 = vadd.f32 %v334_v16, %v1565_v11  ;;  %v660_v14 = vld [vmem:[#allocation2 + $0x28] sm:$0xff]  ;;  %v806_v16 = vrot.slane %v658_v13, 2 }
 0x14a   : > { %v1026_v58 = vmul.f32 -1.442695, %v258_v54 }
 0x14b   : > { %1317 = vpow2.f32 %v1024_v17  ;;  %v807_v17 = vrot.slane %v660_v14, 2 }
 0x14c   : > { %1319 = vtanh.f32 %v327_v4 }
 0x151   : > { %v1316_v18 = vpop.eup %1315 }
 0x152   : > { %v343_v20 = vadd.f32 1.0, %v1316_v18 }
 0x154   : > { %1321 = vrcp.f32 %v343_v20  ;;  %v837_v20 = vrot.slane %v660_v14, 4 }
 0x155   : > { %v1318_v22 = vpop.eup %1317  ;;  %1323 = vtanh.f32 %v333_v21  ;;  %v838_v21 = vrot.slane %v662_v15, 4 }
 0x156   : > { %v344_v23 = vadd.f32 1.0, %v1318_v22  ;;  %v1320_v24 = vpop.eup %1319 }
 0x158   : > { %1325 = vrcp.f32 %v344_v23 }
 0x15e   : > { %v1322_v25 = vpop.eup %1321 }
 0x15f   : > { %v1684_v26 = vmul.f32 %v1322_v25, %v1320_v24  ;;  %v1324_v27 = vpop.eup %1323  ;;  %v656_v24 = vld [vmem:[#allocation2 + $0x8] sm:$0xff]  ;;  %v808_v25 = vsel %vm784_vm0, %v806_v16, %v807_v17 }
 0x162   : > { %v1326_v29 = vpop.eup %1325  ;;  %v1165_v31 = vpop.f32.mrb[4].mxu0 }
 0x163   : > { %v1688_v32 = vmul.f32 %v1326_v29, %v1324_v27  ;;  %v765_v33 = vadd.f32 %v1165_v31, %v335_v28  ;;  %v785_v19 = vrot.slane %v1165_v31, 2  ;;  %v1168_v34 = vpop.f32.mrb[4].mxu1  ;;  %v745_v35 = vpop.f32.mrb[5].mxu0  ;;  %v839_v31 = vsel %vm816_vm1, %v837_v20, %v838_v21 }
 0x164   : > { %v818_v36 = vrot.slane %v1168_v34, 4  ;;  %v764_v37 = vadd.f32 %v745_v35, %v329_v30  ;;  %v755_v38 = vpop.f32.mrb[5].mxu1 }
 0x165   : > { %v1073_v39 = vmul.f32 -1.442695, %v765_v33  ;;  %v786_v40 = vrot.slane %v755_v38, 2  ;;  %v817_v41 = vrot.slane %v755_v38, 4 }
 0x166   : > { %v823_v42 = vadd.f32 %v818_v36, %v335_v28  ;;  %v1072_v43 = vmul.f32 -1.442695, %v764_v37 }
 0x167   : > { %1327 = vpow2.f32 %v1073_v39  ;;  %v787_v44 = vsel %vm784_vm0, %v785_v19, %v786_v40  ;;  %v791_v45 = vadd.f32 %v786_v40, %v335_v28  ;;  %v819_v46 = vsel %vm816_vm1, %v817_v41, %v818_v36 }
 0x168   : > { %v1077_v47 = vmul.f32 -1.442695, %v823_v42  ;;  %1329 = vpow2.f32 %v1072_v43  ;;  %v790_v48 = vadd.f32 %v787_v44, %v329_v30  ;;  %v822_v49 = vadd.f32 %v819_v46, %v329_v30 }
 0x169   : > { %v1075_v50 = vmul.f32 -1.442695, %v791_v45 }
 0x16a   : > { %1331 = vpow2.f32 %v1077_v47  ;;  %v1074_v51 = vmul.f32 -1.442695, %v790_v48  ;;  %v1076_v52 = vmul.f32 -1.442695, %v822_v49 }
 0x16b   : > { %1333 = vpow2.f32 %v1075_v50 }
 0x16c   : > { %1335 = vpow2.f32 %v1074_v51 }
 0x16d   : > { %1337 = vpow2.f32 %v1076_v52 }
 0x16e   : > { %1339 = vpow2.f32 %v1025_v55 }
 0x16f   : > { %1341 = vpow2.f32 %v1026_v58 }
 0x171   : > { %v1328_v59 = vpop.eup %1327 }
 0x172   : > { %v1330_v60 = vpop.eup %1329  ;;  %v773_v61 = vadd.f32 1.0, %v1328_v59 }
 0x173   : > { %v772_v62 = vadd.f32 1.0, %v1330_v60 }
 0x174   : > { %v1332_v63 = vpop.eup %1331  ;;  %1343 = vrcp.f32 %v773_v61 }
 0x175   : > { %v1334_v0 = vpop.eup %1333  ;;  %v831_v1 = vadd.f32 1.0, %v1332_v63  ;;  %1345 = vrcp.f32 %v772_v62 }
 0x176   : > { %v1336_v3 = vpop.eup %1335  ;;  %v799_v5 = vadd.f32 1.0, %v1334_v0 }
 0x177   : > { %v1338_v6 = vpop.eup %1337  ;;  %1347 = vrcp.f32 %v831_v1  ;;  %v798_v7 = vadd.f32 1.0, %v1336_v3 }
 0x178   : > { %1349 = vrcp.f32 %v799_v5  ;;  %v830_v12 = vadd.f32 1.0, %v1338_v6  ;;  %v1340_v56 = vpop.eup %1339 }
 0x179   : > { %1351 = vrcp.f32 %v798_v7  ;;  %v1342_v4 = vpop.eup %1341  ;;  %v355_v35 = vadd.f32 1.0, %v1340_v56 }
 0x17a   : > { %1353 = vrcp.f32 %v830_v12  ;;  %v356_v38 = vadd.f32 1.0, %v1342_v4 }
 0x17b   : > { %1355 = vrcp.f32 %v355_v35 }
 0x17c   : > { %1357 = vrcp.f32 %v356_v38 }
 0x17e   : > { %v1344_v18 = vpop.eup %1343 }
 0x17f   : > { %v1346_v22 = vpop.eup %1345  ;;  %v779_v29 = vmul.f32 %v1344_v18, %v658_v13 }
 0x180   : > { %v778_v19 = vmul.f32 %v1346_v22, %v656_v24 }
 0x181   : > { %v1348_v23 = vpop.eup %1347 }
 0x182   : > { %v1350_v27 = vpop.eup %1349  ;;  %v843_v37 = vmul.f32 %v1348_v23, %v838_v21 }
 0x183   : > { %v1352_v28 = vpop.eup %1351  ;;  %v812_v30 = vmul.f32 %v1350_v27, %v807_v17 }
 0x184   : > { %v1354_v33 = vpop.eup %1353  ;;  %v811_v34 = vmul.f32 %v1352_v28, %v808_v25 }
 0x185   : > { %v814_v36 = vadd.f32 %v812_v30, %v779_v29  ;;  %v842_v40 = vmul.f32 %v1354_v33, %v839_v31  ;;  %v1356_v45 = vpop.eup %1355 }
 0x186   : > { %v813_v39 = vadd.f32 %v811_v34, %v778_v19  ;;  %v1358_v46 = vpop.eup %1357 }
 0x187   : > { %v845_v41 = vadd.f32 %v843_v37, %v814_v36 }
 0x188   : > { %v844_v42 = vadd.f32 %v842_v40, %v813_v39 }
 0x189   : > { %v849_v43 = vadd.f32 %v1688_v32, %v845_v41 }
 0x18a   : > { %v848_v44 = vadd.f32 %v1684_v26, %v844_v42 }
 0x18b   : > { %1359 = vtanh.f32 %v849_v43  ;;  %857 = vst [vmem:[#allocation3 + $0x18] sm:$0x3] %v849_v43 }
 0x18c   : > { %1361 = vtanh.f32 %v848_v44  ;;  %856 = vst [vmem:[#allocation3 + $0x8] sm:$0xff] %v848_v44 }
 0x195   : > { %v1360_v47 = vpop.eup %1359 }
 0x196   : > { %v1362_v48 = vpop.eup %1361  ;;  %v853_v49 = vmul.f32 %v1360_v47, %v1358_v46 }
 0x197   : > { %v852_v50 = vmul.f32 %v1362_v48, %v1356_v45 }
 0x198   : > { %855 = vst [vmem:[#allocation3 + $0x10] sm:$0x3] %v853_v49 }
 0x199   : > { %854 = vst [vmem:[#allocation3] sm:$0xff] %v852_v50 }
 0x19f   : > { %v1314_v59 = vld [vmem:[#allocation3 + $0x10] ss:$8 sps:$4 sm:$0x33]  }
 0x1a0   : > { %v1310_v26 = vld [vmem:[#allocation3] ss:$8 sps:$4 sm:$0x33]   ;;  %v1311_v32 = vld [vmem:[#allocation3] ss:$8 sps:$4 sm:$0xcc]  }
 0x1a1   : > { %1080 = vst.sshfl [vmem:[%s875_s29] sm:$0x33 pattern:$0x76325410] %v1310_v26  ;;  %v890_v51 = vrot.slane %v1311_v32, %v1620_v57  ;;  %v1313_v52 = vld [vmem:[#allocation3 + $0x4] ss:$8 sps:$4 sm:$0xcc]  }
 0x1a2   : > { %v929_v54 = vrot.slane %v1313_v52, %v1620_v57  ;;  %v1312_v55 = vld [vmem:[#allocation3 + $0x4] ss:$8 sps:$4 sm:$0x33]   ;;  %113 = sbr.rel (!%p111_p12) target bundleno = 75 (0x4b), region = 88 }
 0x1a3   : > { %v891_v53 = vcombine.high %v890_v51, %v890_v51 }
 0x1a4   : > { %v930_v58 = vcombine.high %v929_v54, %v929_v54 }
 0x1a5   : > { %896 = vst [vmem:[%s895_s1] sm:$0xf] %v891_v53 }
 0x1a6   : > { %1085 = vst.sshfl [vmem:[%s914_s5] sm:$0x33 pattern:$0x76325410] %v1312_v55 }
 0x1a7   : > { %935 = vst [vmem:[%s934_s4] sm:$0xf] %v930_v58 }
 0x1a8   : > { %1090 = vst.sshfl [vmem:[%s953_s30] sm:$0x33 pattern:$0x76325410] %v1314_v59 }
 0x1a9   :  { %1442 = shalt.err (!%p1439_p3)
}
 0x1aa   :  { %s1443_s12 = scalar_lea.hbm %s1722_s6, 640 }
 0x1ab   :  { %p1444_p4 = scmp.ne.s32.totalorder %s1722_s6, %s1443_s12  ;;  %p1447_p5 = scmp.lt.u32.totalorder %s1443_s12, %s1722_s6 }
 0x1ad   :  { %p1449_p6 = pnand %p1447_p5, %p1444_p4 }
 0x1af   :  { %1452 = shalt.err (!%p1449_p6)
}
 0x1b0   :  { %s1483_s2 = smov 64   ;;  %s1484_s18 = smov 4  }
 0x1b1   :  { %966 = dma.vmem_to_hbm [thread:$0]  %s961_s11, 640, %s1722_s6, [#allocation6], %s1483_s2, %s1483_s2, %s1484_s18  }
 0x1b2   :  { %1465 = dma.done.wait [#allocation6], 640  }
 0x1b3   :  { %1466 = vsyncadd [#allocation6], 4294966656 }
 0x1b4   :  { %970 = vsyncpa [#allocation5], 1 }
 0x1b5   :  { %971 = vsyncpa [#allocation12], 1 }
 0x1b6   :  { %972 = vsyncpa [#allocation6], 1 }
 0x1b7   :  { %973 = vsyncpa [#allocation7], 1 }
 0x1b8   :  { %974 = vsyncpa [#allocation9], 1 }

</bundles_post_ra>
